<compile_context>
chip_gen: v5e
topology: v5e:2x2
jax: 0.10.0
libtpu: 0.0.40
codegen_flags: <defaults>
</compile_context>

<pallas_src>
import functools

import jax
import jax.numpy as jnp
from jax import lax
from jax.experimental import pallas as pl
from jax.experimental.pallas import tpu as pltpu

# ----------------------------- hyperparameters ------------------------------
NUM_NODES = 64
NUM_FEATURES = 32
HIDDEN = 32
NCLASS = 8
ALPHA = 0.5
BETA1 = 1.0
BETA2 = 1.0
GAMMA = 0.5
NORM_LAYERS = 2
ORDERS = 2
DROPOUT = 0.0  # identity


# ------------------------------ fused kernel --------------------------------
def _glognn_kernel(x_ref, adj_ref, w1t_ref, b1_ref, w4t_ref, b4_ref,
                   w3t_ref, b3_ref, w2t_ref, b2_ref,
                   out_ref,
                   *, alpha, beta1, beta2, gamma, norm_layers, orders):
  f32 = jnp.float32
  x_in = x_ref[0]            # (N, F)
  adj = adj_ref[0]           # (N, N)
  N = adj.shape[0]

  # --- input mix: relu(alpha * fc1(x) + (1 - alpha) * fc4(adj)) -------------
  xX = jnp.dot(x_in, w1t_ref[...], preferred_element_type=f32) + b1_ref[...]
  xA = jnp.dot(adj, w4t_ref[...], preferred_element_type=f32) + b4_ref[...]
  h = jnp.maximum(alpha * xX + (1.0 - alpha) * xA, 0.0)
  # dropout(p=0.0) -> identity
  # --- fc3 + relu ------------------------------------------------------------
  h = jnp.maximum(
      jnp.dot(h, w3t_ref[...], preferred_element_type=f32) + b3_ref[...], 0.0)
  # dropout(p=0.0) -> identity
  # --- fc2 -------------------------------------------------------------------
  h = jnp.dot(h, w2t_ref[...], preferred_element_type=f32) + b2_ref[...]
  h0 = h                                    # (N, C)

  coe = 1.0 / (beta1 + beta2)
  coe1 = 1.0 - gamma
  coe2 = 1.0 / coe1
  c2sq = coe2 * coe2
  C = h.shape[1]

  # identity constants built from iota (safe in-kernel constant construction)
  ii = lax.broadcasted_iota(jnp.int32, (C, C), 0)
  jj = lax.broadcasted_iota(jnp.int32, (C, C), 1)
  eye_c = (ii == jj).astype(f32)            # (C, C)

  ni = lax.broadcasted_iota(jnp.int32, (N, N), 0)
  nj = lax.broadcasted_iota(jnp.int32, (N, N), 1)
  eye_n = (ni == nj).astype(f32)            # (N, N)

  # Precompute S = I + adj + adj^2 + ... (orders powers) once; reused by every
  # norm layer:  order_func1(x, res, adj) == S @ res.
  S = eye_n + adj
  ap = adj
  for _ in range(orders - 1):
    ap = jnp.dot(adj, ap, preferred_element_type=f32)
    S = S + ap

  xcur = h
  for _ in range(norm_layers):              # NORM_LAYERS=2, fully unrolled
    # x^T x : contract over node axis (no explicit transpose materialized)
    xtx = lax.dot_general(xcur, xcur, (((0,), (0,)), ((), ())),
                          preferred_element_type=f32)          # (C, C)
    mat = c2sq * eye_c + coe * xtx          # SPD, diagonal >= coe2^2

    # Solve mat @ r1 = xtx via unrolled Gauss-Jordan on ONE augmented matrix
    # AB = [mat | xtx]  (C, 2C).  Replaces torch.inverse(...) @ xtx.
    AB = jnp.concatenate([mat, xtx], axis=1)                   # (C, 2C)
    for k in range(C):
      ek = eye_c[:, k:k + 1]                # (C,1) static slice: 1 at row k
      inv_p = pl.reciprocal(AB[k:k + 1, k:k + 1])              # (1, 1)
      row = AB[k:k + 1, :] * inv_p          # normalized pivot row (1, 2C)
      # g: +1 at the pivot row (write normalized row), -AB[i,k] elsewhere
      g = ek - AB[:, k:k + 1] * (1.0 - ek)                     # (C, 1)
      AB = AB * (1.0 - ek) + g * row        # one fused eliminate + write-back
    r1 = AB[:, C:]                          # inv(mat) @ xtx   (C, C)

    # res = coe1*coe*x - coe1*coe^2 * x @ r1  ==  coe1*coe * x @ (I - coe*r1)
    M = eye_c - coe * r1                    # tiny (C, C) VPU op
    res = (coe1 * coe) * jnp.dot(xcur, M, preferred_element_type=f32)

    # tmp = x^T @ res  (contract over node axis)
    tmp = lax.dot_general(xcur, res, (((0,), (0,)), ((), ())),
                          preferred_element_type=f32)          # (C, C)

    # order_func1 via precomputed S
    s = jnp.dot(S, res, preferred_element_type=f32)            # (N, C)

    # coe1*x@tmp + beta2*s - gamma*coe1*h0@tmp + gamma*h0
    #   == coe1*(x - gamma*h0)@tmp + beta2*s + gamma*h0   (one matmul)
    xcur = (coe1 * jnp.dot(xcur - gamma * h0, tmp,
                           preferred_element_type=f32)
            + beta2 * s + gamma * h0)

  # --- softmax / log_softmax over classes, lane-packed single output ---------
  m = jnp.max(xcur, axis=1, keepdims=True)
  z = xcur - m
  e = jnp.exp(z)
  ssum = jnp.sum(e, axis=1, keepdims=True)
  log_sm = z - jnp.log(ssum)
  sm = e * pl.reciprocal(ssum)
  out_ref[0] = jnp.concatenate([log_sm, sm], axis=1)           # (N, 2C)


# ------------------------------ forward pass ---------------------------------
def glognn_forward(x, adj, params):
  """x: (B, N, F), adj: (B, N, N) -> (log_softmax, softmax), each (B, N, C)."""
  B, N, F = x.shape
  C = NCLASS
  H = HIDDEN
  kern = functools.partial(
      _glognn_kernel, alpha=float(ALPHA), beta1=float(BETA1),
      beta2=float(BETA2), gamma=float(GAMMA),
      norm_layers=NORM_LAYERS, orders=ORDERS)

  const = lambda b: (0, 0)  # weights: same block every grid step (VMEM-resident)
  merged = pl.pallas_call(
      kern,
      grid=(B,),
      out_shape=jax.ShapeDtypeStruct((B, N, 2 * C), jnp.float32),
      in_specs=[
          pl.BlockSpec((1, N, F), lambda b: (b, 0, 0)),   # x
          pl.BlockSpec((1, N, N), lambda b: (b, 0, 0)),   # adj
          pl.BlockSpec((F, H), const), pl.BlockSpec((1, H), const),  # fc1
          pl.BlockSpec((N, H), const), pl.BlockSpec((1, H), const),  # fc4
          pl.BlockSpec((H, H), const), pl.BlockSpec((1, H), const),  # fc3
          pl.BlockSpec((H, C), const), pl.BlockSpec((1, C), const),  # fc2
      ],
      out_specs=pl.BlockSpec((1, N, 2 * C), lambda b: (b, 0, 0)),
      compiler_params=pltpu.CompilerParams(
          dimension_semantics=("parallel",)),
  )(x, adj,
    params["w1t"], params["b1"],
    params["w4t"], params["b4"],
    params["w3t"], params["b3"],
    params["w2t"], params["b2"])
  return merged[..., :C], merged[..., C:]


def init_params(key):
  # Weights stored PRE-TRANSPOSED as (in_dim, out_dim); biases as (1, out_dim),
  # so the forward path has zero per-call transpose/reshape glue.
  ks = jax.random.split(key, 8)

  def lin(kw, kb, out_dim, in_dim):
    bound = 1.0 / (float(in_dim) ** 0.5)
    w = jax.random.uniform(kw, (out_dim, in_dim), jnp.float32, -bound, bound)
    b = jax.random.uniform(kb, (out_dim,), jnp.float32, -bound, bound)
    return jnp.transpose(w), b.reshape(1, out_dim)

  w1t, b1 = lin(ks[0], ks[1], HIDDEN, NUM_FEATURES)   # fc1: (F, H)
  w2t, b2 = lin(ks[2], ks[3], NCLASS, HIDDEN)         # fc2: (H, C)
  w3t, b3 = lin(ks[4], ks[5], HIDDEN, HIDDEN)         # fc3: (H, H)
  w4t, b4 = lin(ks[6], ks[7], HIDDEN, NUM_NODES)      # fc4: (N, H)
  return dict(w1t=w1t, b1=b1, w2t=w2t, b2=b2,
              w3t=w3t, b3=b3, w4t=w4t, b4=b4)


# -------------------- pure-JAX reference (mirrors the torch module) ----------
def _glognn_ref(x, adj, params):
  relu = lambda v: jnp.maximum(v, 0.0)
  xX = x @ params["w1t"] + params["b1"]
  xA = adj @ params["w4t"] + params["b4"]
  h = relu(ALPHA * xX + (1.0 - ALPHA) * xA)
  h = relu(h @ params["w3t"] + params["b3"])
  h = h @ params["w2t"] + params["b2"]
  h0 = h
  coe = 1.0 / (BETA1 + BETA2)
  coe1 = 1.0 - GAMMA
  coe2 = 1.0 / coe1
  eye = jnp.eye(NCLASS, dtype=jnp.float32)
  xc = h
  for _ in range(NORM_LAYERS):
    xtx = xc.T @ xc
    inv = jnp.linalg.inv(coe2 * coe2 * eye + coe * xtx)
    r1 = inv @ xtx
    res = coe1 * coe * xc - coe1 * coe * coe * (xc @ r1)
    tmp = xc.T @ res
    t = res
    s = res
    for _ in range(ORDERS):
      t = adj @ t
      s = s + t
    xc = coe1 * (xc @ tmp) + BETA2 * s - GAMMA * coe1 * (h0 @ tmp) + GAMMA * h0
  return jax.nn.log_softmax(xc, axis=1), jax.nn.softmax(xc, axis=1)


if __name__ == "__main__":
  key = jax.random.PRNGKey(0)
  kx, ka, kp = jax.random.split(key, 3)
  B = 2
  x = jax.random.normal(kx, (B, NUM_NODES, NUM_FEATURES), jnp.float32)
  # symmetric row-normalized random adjacency per graph
  a = jax.random.uniform(ka, (B, NUM_NODES, NUM_NODES), jnp.float32)
  a = (a + jnp.transpose(a, (0, 2, 1))) * 0.5
  adj = a / jnp.sum(a, axis=2, keepdims=True)
  params = init_params(kp)

  log_probs, probs = jax.jit(glognn_forward)(x, adj, params)
  jax.block_until_ready(log_probs)
  jax.block_until_ready(probs)

  assert log_probs.shape == (B, NUM_NODES, NCLASS)
  assert probs.shape == (B, NUM_NODES, NCLASS)
  assert bool(jnp.all(jnp.isfinite(log_probs)))
  assert bool(jnp.all(jnp.isfinite(probs)))

  # correctness vs. pure-JAX f32 reference (generous tol: f32 vs in-kernel GJ)
  ref_ls, ref_sm = jax.vmap(lambda xx, aa: _glognn_ref(xx, aa, params))(x, adj)
  assert float(jnp.max(jnp.abs(probs - ref_sm))) < 1e-2
  assert float(jnp.max(jnp.abs(log_probs - ref_ls))) < 1e-2

  print("KERNEL_OK")
</pallas_src>

<mosaic_0001>
module attributes {stable_mosaic.version = 11 : i64} {
  func.func @_glognn_kernel(%arg0: i32, %arg1: memref<1x64x32xf32, #tpu.memory_space<vmem>>, %arg2: memref<1x64x64xf32, #tpu.memory_space<vmem>>, %arg3: memref<32x32xf32, #tpu.memory_space<vmem>>, %arg4: memref<1x32xf32, #tpu.memory_space<vmem>>, %arg5: memref<64x32xf32, #tpu.memory_space<vmem>>, %arg6: memref<1x32xf32, #tpu.memory_space<vmem>>, %arg7: memref<32x32xf32, #tpu.memory_space<vmem>>, %arg8: memref<1x32xf32, #tpu.memory_space<vmem>>, %arg9: memref<32x8xf32, #tpu.memory_space<vmem>>, %arg10: memref<1x8xf32, #tpu.memory_space<vmem>>, %arg11: memref<1x64x16xf32, #tpu.memory_space<vmem>>) attributes {dimension_semantics = [#tpu.dimension_semantics<parallel>], iteration_bounds = array<i64: 2>, scalar_prefetch = 0 : i64, scratch_operands = 0 : i64, tpu.core_type = #tpu.core_type<tc>, window_params = [{transform_indices = @transform_0, window_bounds = array<i64: 1, 64, 32>}, {transform_indices = @transform_1, window_bounds = array<i64: 1, 64, 64>}, {pipeline_mode = #tpu.pipeline_mode<synchronous>, transform_indices = @transform_2, window_bounds = array<i64: 32, 32>}, {pipeline_mode = #tpu.pipeline_mode<synchronous>, transform_indices = @transform_3, window_bounds = array<i64: 1, 32>}, {pipeline_mode = #tpu.pipeline_mode<synchronous>, transform_indices = @transform_4, window_bounds = array<i64: 64, 32>}, {pipeline_mode = #tpu.pipeline_mode<synchronous>, transform_indices = @transform_5, window_bounds = array<i64: 1, 32>}, {pipeline_mode = #tpu.pipeline_mode<synchronous>, transform_indices = @transform_6, window_bounds = array<i64: 32, 32>}, {pipeline_mode = #tpu.pipeline_mode<synchronous>, transform_indices = @transform_7, window_bounds = array<i64: 1, 32>}, {pipeline_mode = #tpu.pipeline_mode<synchronous>, transform_indices = @transform_8, window_bounds = array<i64: 32, 8>}, {pipeline_mode = #tpu.pipeline_mode<synchronous>, transform_indices = @transform_9, window_bounds = array<i64: 1, 8>}, {transform_indices = @transform_10, window_bounds = array<i64: 1, 64, 16>}]} {
    %c0 = arith.constant 0 : index
    %c0_0 = arith.constant 0 : index
    %c0_1 = arith.constant 0 : index
    %0 = vector.load %arg1[%c0, %c0_0, %c0_1] : memref<1x64x32xf32, #tpu.memory_space<vmem>>, vector<1x64x32xf32>
    %1 = vector.shape_cast %0 : vector<1x64x32xf32> to vector<64x32xf32>
    %c0_2 = arith.constant 0 : index
    %c0_3 = arith.constant 0 : index
    %c0_4 = arith.constant 0 : index
    %2 = vector.load %arg2[%c0_2, %c0_3, %c0_4] : memref<1x64x64xf32, #tpu.memory_space<vmem>>, vector<1x64x64xf32>
    %3 = vector.shape_cast %2 : vector<1x64x64xf32> to vector<64x64xf32>
    %c0_5 = arith.constant 0 : index
    %c0_6 = arith.constant 0 : index
    %4 = vector.load %arg3[%c0_5, %c0_6] : memref<32x32xf32, #tpu.memory_space<vmem>>, vector<32x32xf32>
    %cst = arith.constant dense<0.000000e+00> : vector<64x32xf32>
    %5 = tpu.matmul %1, %4, %cst {dimension_numbers = #tpu.dot_dimension_numbers<[1], [0], [0], [1], [0, 0, 1, 1], [], []>} : vector<64x32xf32>, vector<32x32xf32>, vector<64x32xf32> -> vector<64x32xf32>
    %c0_7 = arith.constant 0 : index
    %c0_8 = arith.constant 0 : index
    %6 = vector.load %arg4[%c0_7, %c0_8] : memref<1x32xf32, #tpu.memory_space<vmem>>, vector<1x32xf32>
    %7 = vector.broadcast %6 : vector<1x32xf32> to vector<64x32xf32>
    %8 = arith.addf %5, %7 : vector<64x32xf32>
    %c0_9 = arith.constant 0 : index
    %c0_10 = arith.constant 0 : index
    %9 = vector.load %arg5[%c0_9, %c0_10] : memref<64x32xf32, #tpu.memory_space<vmem>>, vector<64x32xf32>
    %cst_11 = arith.constant dense<0.000000e+00> : vector<64x32xf32>
    %10 = tpu.matmul %3, %9, %cst_11 {dimension_numbers = #tpu.dot_dimension_numbers<[1], [0], [0], [1], [0, 0, 1, 1], [], []>} : vector<64x64xf32>, vector<64x32xf32>, vector<64x32xf32> -> vector<64x32xf32>
    %c0_12 = arith.constant 0 : index
    %c0_13 = arith.constant 0 : index
    %11 = vector.load %arg6[%c0_12, %c0_13] : memref<1x32xf32, #tpu.memory_space<vmem>>, vector<1x32xf32>
    %12 = vector.broadcast %11 : vector<1x32xf32> to vector<64x32xf32>
    %13 = arith.addf %10, %12 : vector<64x32xf32>
    %cst_14 = arith.constant 5.000000e-01 : f32
    %14 = vector.broadcast %cst_14 : f32 to vector<64x32xf32>
    %15 = arith.mulf %14, %8 : vector<64x32xf32>
    %cst_15 = arith.constant 5.000000e-01 : f32
    %16 = vector.broadcast %cst_15 : f32 to vector<64x32xf32>
    %17 = arith.mulf %16, %13 : vector<64x32xf32>
    %18 = arith.addf %15, %17 : vector<64x32xf32>
    %cst_16 = arith.constant 0.000000e+00 : f32
    %19 = vector.broadcast %cst_16 : f32 to vector<64x32xf32>
    %20 = arith.maximumf %18, %19 : vector<64x32xf32>
    %c0_17 = arith.constant 0 : index
    %c0_18 = arith.constant 0 : index
    %21 = vector.load %arg7[%c0_17, %c0_18] : memref<32x32xf32, #tpu.memory_space<vmem>>, vector<32x32xf32>
    %cst_19 = arith.constant dense<0.000000e+00> : vector<64x32xf32>
    %22 = tpu.matmul %20, %21, %cst_19 {dimension_numbers = #tpu.dot_dimension_numbers<[1], [0], [0], [1], [0, 0, 1, 1], [], []>} : vector<64x32xf32>, vector<32x32xf32>, vector<64x32xf32> -> vector<64x32xf32>
    %c0_20 = arith.constant 0 : index
    %c0_21 = arith.constant 0 : index
    %23 = vector.load %arg8[%c0_20, %c0_21] : memref<1x32xf32, #tpu.memory_space<vmem>>, vector<1x32xf32>
    %24 = vector.broadcast %23 : vector<1x32xf32> to vector<64x32xf32>
    %25 = arith.addf %22, %24 : vector<64x32xf32>
    %cst_22 = arith.constant 0.000000e+00 : f32
    %26 = vector.broadcast %cst_22 : f32 to vector<64x32xf32>
    %27 = arith.maximumf %25, %26 : vector<64x32xf32>
    %c0_23 = arith.constant 0 : index
    %c0_24 = arith.constant 0 : index
    %28 = vector.load %arg9[%c0_23, %c0_24] : memref<32x8xf32, #tpu.memory_space<vmem>>, vector<32x8xf32>
    %cst_25 = arith.constant dense<0.000000e+00> : vector<64x8xf32>
    %29 = tpu.matmul %27, %28, %cst_25 {dimension_numbers = #tpu.dot_dimension_numbers<[1], [0], [0], [1], [0, 0, 1, 1], [], []>} : vector<64x32xf32>, vector<32x8xf32>, vector<64x8xf32> -> vector<64x8xf32>
    %c0_26 = arith.constant 0 : index
    %c0_27 = arith.constant 0 : index
    %30 = vector.load %arg10[%c0_26, %c0_27] : memref<1x8xf32, #tpu.memory_space<vmem>>, vector<1x8xf32>
    %31 = vector.broadcast %30 : vector<1x8xf32> to vector<64x8xf32>
    %32 = arith.addf %29, %31 : vector<64x8xf32>
    %33 = tpu.iota {dimensions = array<i32: 0>} : vector<8x8xi32>
    %34 = tpu.iota {dimensions = array<i32: 1>} : vector<8x8xi32>
    %35 = arith.cmpi eq, %33, %34 : vector<8x8xi32>
    %36 = arith.extui %35 : vector<8x8xi1> to vector<8x8xi32>
    %37 = arith.sitofp %36 : vector<8x8xi32> to vector<8x8xf32>
    %38 = tpu.iota {dimensions = array<i32: 0>} : vector<64x64xi32>
    %39 = tpu.iota {dimensions = array<i32: 1>} : vector<64x64xi32>
    %40 = arith.cmpi eq, %38, %39 : vector<64x64xi32>
    %41 = arith.extui %40 : vector<64x64xi1> to vector<64x64xi32>
    %42 = arith.sitofp %41 : vector<64x64xi32> to vector<64x64xf32>
    %43 = arith.addf %42, %3 : vector<64x64xf32>
    %cst_28 = arith.constant dense<0.000000e+00> : vector<64x64xf32>
    %44 = tpu.matmul %3, %3, %cst_28 {dimension_numbers = #tpu.dot_dimension_numbers<[1], [0], [0], [1], [0, 0, 1, 1], [], []>} : vector<64x64xf32>, vector<64x64xf32>, vector<64x64xf32> -> vector<64x64xf32>
    %45 = arith.addf %43, %44 : vector<64x64xf32>
    %cst_29 = arith.constant dense<0.000000e+00> : vector<8x8xf32>
    %46 = tpu.matmul %32, %32, %cst_29 {dimension_numbers = #tpu.dot_dimension_numbers<[0], [0], [1], [1], [0, 1, 1, 1], [], []>} : vector<64x8xf32>, vector<64x8xf32>, vector<8x8xf32> -> vector<8x8xf32>
    %cst_30 = arith.constant 4.000000e+00 : f32
    %47 = vector.broadcast %cst_30 : f32 to vector<8x8xf32>
    %48 = arith.mulf %47, %37 : vector<8x8xf32>
    %cst_31 = arith.constant 5.000000e-01 : f32
    %49 = vector.broadcast %cst_31 : f32 to vector<8x8xf32>
    %50 = arith.mulf %49, %46 : vector<8x8xf32>
    %51 = arith.addf %48, %50 : vector<8x8xf32>
    %52 = tpu.concatenate %51, %46 in 1 : vector<8x8xf32>, vector<8x8xf32> -> vector<8x16xf32>
    %53 = vector.extract_strided_slice %37 {offsets = [0, 0], sizes = [8, 1], strides = [1, 1]} : vector<8x8xf32> to vector<8x1xf32>
    %54 = vector.extract_strided_slice %52 {offsets = [0, 0], sizes = [1, 1], strides = [1, 1]} : vector<8x16xf32> to vector<1x1xf32>
    %55 = tpu.reciprocal %54 : vector<1x1xf32> -> vector<1x1xf32>
    %56 = vector.extract_strided_slice %52 {offsets = [0, 0], sizes = [1, 16], strides = [1, 1]} : vector<8x16xf32> to vector<1x16xf32>
    %57 = vector.broadcast %55 : vector<1x1xf32> to vector<1x16xf32>
    %58 = arith.mulf %56, %57 : vector<1x16xf32>
    %59 = vector.extract_strided_slice %52 {offsets = [0, 0], sizes = [8, 1], strides = [1, 1]} : vector<8x16xf32> to vector<8x1xf32>
    %cst_32 = arith.constant 1.000000e+00 : f32
    %60 = vector.broadcast %cst_32 : f32 to vector<8x1xf32>
    %61 = arith.subf %60, %53 : vector<8x1xf32>
    %62 = arith.mulf %59, %61 : vector<8x1xf32>
    %63 = arith.subf %53, %62 : vector<8x1xf32>
    %cst_33 = arith.constant 1.000000e+00 : f32
    %64 = vector.broadcast %cst_33 : f32 to vector<8x1xf32>
    %65 = arith.subf %64, %53 : vector<8x1xf32>
    %66 = vector.broadcast %65 : vector<8x1xf32> to vector<8x16xf32>
    %67 = arith.mulf %52, %66 : vector<8x16xf32>
    %68 = vector.broadcast %63 : vector<8x1xf32> to vector<8x16xf32>
    %69 = vector.broadcast %58 : vector<1x16xf32> to vector<8x16xf32>
    %70 = arith.mulf %68, %69 : vector<8x16xf32>
    %71 = arith.addf %67, %70 : vector<8x16xf32>
    %72 = vector.extract_strided_slice %37 {offsets = [0, 1], sizes = [8, 1], strides = [1, 1]} : vector<8x8xf32> to vector<8x1xf32>
    %73 = vector.extract_strided_slice %71 {offsets = [1, 1], sizes = [1, 1], strides = [1, 1]} : vector<8x16xf32> to vector<1x1xf32>
    %74 = tpu.reciprocal %73 : vector<1x1xf32> -> vector<1x1xf32>
    %75 = vector.extract_strided_slice %71 {offsets = [1, 0], sizes = [1, 16], strides = [1, 1]} : vector<8x16xf32> to vector<1x16xf32>
    %76 = vector.broadcast %74 : vector<1x1xf32> to vector<1x16xf32>
    %77 = arith.mulf %75, %76 : vector<1x16xf32>
    %78 = vector.extract_strided_slice %71 {offsets = [0, 1], sizes = [8, 1], strides = [1, 1]} : vector<8x16xf32> to vector<8x1xf32>
    %cst_34 = arith.constant 1.000000e+00 : f32
    %79 = vector.broadcast %cst_34 : f32 to vector<8x1xf32>
    %80 = arith.subf %79, %72 : vector<8x1xf32>
    %81 = arith.mulf %78, %80 : vector<8x1xf32>
    %82 = arith.subf %72, %81 : vector<8x1xf32>
    %cst_35 = arith.constant 1.000000e+00 : f32
    %83 = vector.broadcast %cst_35 : f32 to vector<8x1xf32>
    %84 = arith.subf %83, %72 : vector<8x1xf32>
    %85 = vector.broadcast %84 : vector<8x1xf32> to vector<8x16xf32>
    %86 = arith.mulf %71, %85 : vector<8x16xf32>
    %87 = vector.broadcast %82 : vector<8x1xf32> to vector<8x16xf32>
    %88 = vector.broadcast %77 : vector<1x16xf32> to vector<8x16xf32>
    %89 = arith.mulf %87, %88 : vector<8x16xf32>
    %90 = arith.addf %86, %89 : vector<8x16xf32>
    %91 = vector.extract_strided_slice %37 {offsets = [0, 2], sizes = [8, 1], strides = [1, 1]} : vector<8x8xf32> to vector<8x1xf32>
    %92 = vector.extract_strided_slice %90 {offsets = [2, 2], sizes = [1, 1], strides = [1, 1]} : vector<8x16xf32> to vector<1x1xf32>
    %93 = tpu.reciprocal %92 : vector<1x1xf32> -> vector<1x1xf32>
    %94 = vector.extract_strided_slice %90 {offsets = [2, 0], sizes = [1, 16], strides = [1, 1]} : vector<8x16xf32> to vector<1x16xf32>
    %95 = vector.broadcast %93 : vector<1x1xf32> to vector<1x16xf32>
    %96 = arith.mulf %94, %95 : vector<1x16xf32>
    %97 = vector.extract_strided_slice %90 {offsets = [0, 2], sizes = [8, 1], strides = [1, 1]} : vector<8x16xf32> to vector<8x1xf32>
    %cst_36 = arith.constant 1.000000e+00 : f32
    %98 = vector.broadcast %cst_36 : f32 to vector<8x1xf32>
    %99 = arith.subf %98, %91 : vector<8x1xf32>
    %100 = arith.mulf %97, %99 : vector<8x1xf32>
    %101 = arith.subf %91, %100 : vector<8x1xf32>
    %cst_37 = arith.constant 1.000000e+00 : f32
    %102 = vector.broadcast %cst_37 : f32 to vector<8x1xf32>
    %103 = arith.subf %102, %91 : vector<8x1xf32>
    %104 = vector.broadcast %103 : vector<8x1xf32> to vector<8x16xf32>
    %105 = arith.mulf %90, %104 : vector<8x16xf32>
    %106 = vector.broadcast %101 : vector<8x1xf32> to vector<8x16xf32>
    %107 = vector.broadcast %96 : vector<1x16xf32> to vector<8x16xf32>
    %108 = arith.mulf %106, %107 : vector<8x16xf32>
    %109 = arith.addf %105, %108 : vector<8x16xf32>
    %110 = vector.extract_strided_slice %37 {offsets = [0, 3], sizes = [8, 1], strides = [1, 1]} : vector<8x8xf32> to vector<8x1xf32>
    %111 = vector.extract_strided_slice %109 {offsets = [3, 3], sizes = [1, 1], strides = [1, 1]} : vector<8x16xf32> to vector<1x1xf32>
    %112 = tpu.reciprocal %111 : vector<1x1xf32> -> vector<1x1xf32>
    %113 = vector.extract_strided_slice %109 {offsets = [3, 0], sizes = [1, 16], strides = [1, 1]} : vector<8x16xf32> to vector<1x16xf32>
    %114 = vector.broadcast %112 : vector<1x1xf32> to vector<1x16xf32>
    %115 = arith.mulf %113, %114 : vector<1x16xf32>
    %116 = vector.extract_strided_slice %109 {offsets = [0, 3], sizes = [8, 1], strides = [1, 1]} : vector<8x16xf32> to vector<8x1xf32>
    %cst_38 = arith.constant 1.000000e+00 : f32
    %117 = vector.broadcast %cst_38 : f32 to vector<8x1xf32>
    %118 = arith.subf %117, %110 : vector<8x1xf32>
    %119 = arith.mulf %116, %118 : vector<8x1xf32>
    %120 = arith.subf %110, %119 : vector<8x1xf32>
    %cst_39 = arith.constant 1.000000e+00 : f32
    %121 = vector.broadcast %cst_39 : f32 to vector<8x1xf32>
    %122 = arith.subf %121, %110 : vector<8x1xf32>
    %123 = vector.broadcast %122 : vector<8x1xf32> to vector<8x16xf32>
    %124 = arith.mulf %109, %123 : vector<8x16xf32>
    %125 = vector.broadcast %120 : vector<8x1xf32> to vector<8x16xf32>
    %126 = vector.broadcast %115 : vector<1x16xf32> to vector<8x16xf32>
    %127 = arith.mulf %125, %126 : vector<8x16xf32>
    %128 = arith.addf %124, %127 : vector<8x16xf32>
    %129 = vector.extract_strided_slice %37 {offsets = [0, 4], sizes = [8, 1], strides = [1, 1]} : vector<8x8xf32> to vector<8x1xf32>
    %130 = vector.extract_strided_slice %128 {offsets = [4, 4], sizes = [1, 1], strides = [1, 1]} : vector<8x16xf32> to vector<1x1xf32>
    %131 = tpu.reciprocal %130 : vector<1x1xf32> -> vector<1x1xf32>
    %132 = vector.extract_strided_slice %128 {offsets = [4, 0], sizes = [1, 16], strides = [1, 1]} : vector<8x16xf32> to vector<1x16xf32>
    %133 = vector.broadcast %131 : vector<1x1xf32> to vector<1x16xf32>
    %134 = arith.mulf %132, %133 : vector<1x16xf32>
    %135 = vector.extract_strided_slice %128 {offsets = [0, 4], sizes = [8, 1], strides = [1, 1]} : vector<8x16xf32> to vector<8x1xf32>
    %cst_40 = arith.constant 1.000000e+00 : f32
    %136 = vector.broadcast %cst_40 : f32 to vector<8x1xf32>
    %137 = arith.subf %136, %129 : vector<8x1xf32>
    %138 = arith.mulf %135, %137 : vector<8x1xf32>
    %139 = arith.subf %129, %138 : vector<8x1xf32>
    %cst_41 = arith.constant 1.000000e+00 : f32
    %140 = vector.broadcast %cst_41 : f32 to vector<8x1xf32>
    %141 = arith.subf %140, %129 : vector<8x1xf32>
    %142 = vector.broadcast %141 : vector<8x1xf32> to vector<8x16xf32>
    %143 = arith.mulf %128, %142 : vector<8x16xf32>
    %144 = vector.broadcast %139 : vector<8x1xf32> to vector<8x16xf32>
    %145 = vector.broadcast %134 : vector<1x16xf32> to vector<8x16xf32>
    %146 = arith.mulf %144, %145 : vector<8x16xf32>
    %147 = arith.addf %143, %146 : vector<8x16xf32>
    %148 = vector.extract_strided_slice %37 {offsets = [0, 5], sizes = [8, 1], strides = [1, 1]} : vector<8x8xf32> to vector<8x1xf32>
    %149 = vector.extract_strided_slice %147 {offsets = [5, 5], sizes = [1, 1], strides = [1, 1]} : vector<8x16xf32> to vector<1x1xf32>
    %150 = tpu.reciprocal %149 : vector<1x1xf32> -> vector<1x1xf32>
    %151 = vector.extract_strided_slice %147 {offsets = [5, 0], sizes = [1, 16], strides = [1, 1]} : vector<8x16xf32> to vector<1x16xf32>
    %152 = vector.broadcast %150 : vector<1x1xf32> to vector<1x16xf32>
    %153 = arith.mulf %151, %152 : vector<1x16xf32>
    %154 = vector.extract_strided_slice %147 {offsets = [0, 5], sizes = [8, 1], strides = [1, 1]} : vector<8x16xf32> to vector<8x1xf32>
    %cst_42 = arith.constant 1.000000e+00 : f32
    %155 = vector.broadcast %cst_42 : f32 to vector<8x1xf32>
    %156 = arith.subf %155, %148 : vector<8x1xf32>
    %157 = arith.mulf %154, %156 : vector<8x1xf32>
    %158 = arith.subf %148, %157 : vector<8x1xf32>
    %cst_43 = arith.constant 1.000000e+00 : f32
    %159 = vector.broadcast %cst_43 : f32 to vector<8x1xf32>
    %160 = arith.subf %159, %148 : vector<8x1xf32>
    %161 = vector.broadcast %160 : vector<8x1xf32> to vector<8x16xf32>
    %162 = arith.mulf %147, %161 : vector<8x16xf32>
    %163 = vector.broadcast %158 : vector<8x1xf32> to vector<8x16xf32>
    %164 = vector.broadcast %153 : vector<1x16xf32> to vector<8x16xf32>
    %165 = arith.mulf %163, %164 : vector<8x16xf32>
    %166 = arith.addf %162, %165 : vector<8x16xf32>
    %167 = vector.extract_strided_slice %37 {offsets = [0, 6], sizes = [8, 1], strides = [1, 1]} : vector<8x8xf32> to vector<8x1xf32>
    %168 = vector.extract_strided_slice %166 {offsets = [6, 6], sizes = [1, 1], strides = [1, 1]} : vector<8x16xf32> to vector<1x1xf32>
    %169 = tpu.reciprocal %168 : vector<1x1xf32> -> vector<1x1xf32>
    %170 = vector.extract_strided_slice %166 {offsets = [6, 0], sizes = [1, 16], strides = [1, 1]} : vector<8x16xf32> to vector<1x16xf32>
    %171 = vector.broadcast %169 : vector<1x1xf32> to vector<1x16xf32>
    %172 = arith.mulf %170, %171 : vector<1x16xf32>
    %173 = vector.extract_strided_slice %166 {offsets = [0, 6], sizes = [8, 1], strides = [1, 1]} : vector<8x16xf32> to vector<8x1xf32>
    %cst_44 = arith.constant 1.000000e+00 : f32
    %174 = vector.broadcast %cst_44 : f32 to vector<8x1xf32>
    %175 = arith.subf %174, %167 : vector<8x1xf32>
    %176 = arith.mulf %173, %175 : vector<8x1xf32>
    %177 = arith.subf %167, %176 : vector<8x1xf32>
    %cst_45 = arith.constant 1.000000e+00 : f32
    %178 = vector.broadcast %cst_45 : f32 to vector<8x1xf32>
    %179 = arith.subf %178, %167 : vector<8x1xf32>
    %180 = vector.broadcast %179 : vector<8x1xf32> to vector<8x16xf32>
    %181 = arith.mulf %166, %180 : vector<8x16xf32>
    %182 = vector.broadcast %177 : vector<8x1xf32> to vector<8x16xf32>
    %183 = vector.broadcast %172 : vector<1x16xf32> to vector<8x16xf32>
    %184 = arith.mulf %182, %183 : vector<8x16xf32>
    %185 = arith.addf %181, %184 : vector<8x16xf32>
    %186 = vector.extract_strided_slice %37 {offsets = [0, 7], sizes = [8, 1], strides = [1, 1]} : vector<8x8xf32> to vector<8x1xf32>
    %187 = vector.extract_strided_slice %185 {offsets = [7, 7], sizes = [1, 1], strides = [1, 1]} : vector<8x16xf32> to vector<1x1xf32>
    %188 = tpu.reciprocal %187 : vector<1x1xf32> -> vector<1x1xf32>
    %189 = vector.extract_strided_slice %185 {offsets = [7, 0], sizes = [1, 16], strides = [1, 1]} : vector<8x16xf32> to vector<1x16xf32>
    %190 = vector.broadcast %188 : vector<1x1xf32> to vector<1x16xf32>
    %191 = arith.mulf %189, %190 : vector<1x16xf32>
    %192 = vector.extract_strided_slice %185 {offsets = [0, 7], sizes = [8, 1], strides = [1, 1]} : vector<8x16xf32> to vector<8x1xf32>
    %cst_46 = arith.constant 1.000000e+00 : f32
    %193 = vector.broadcast %cst_46 : f32 to vector<8x1xf32>
    %194 = arith.subf %193, %186 : vector<8x1xf32>
    %195 = arith.mulf %192, %194 : vector<8x1xf32>
    %196 = arith.subf %186, %195 : vector<8x1xf32>
    %cst_47 = arith.constant 1.000000e+00 : f32
    %197 = vector.broadcast %cst_47 : f32 to vector<8x1xf32>
    %198 = arith.subf %197, %186 : vector<8x1xf32>
    %199 = vector.broadcast %198 : vector<8x1xf32> to vector<8x16xf32>
    %200 = arith.mulf %185, %199 : vector<8x16xf32>
    %201 = vector.broadcast %196 : vector<8x1xf32> to vector<8x16xf32>
    %202 = vector.broadcast %191 : vector<1x16xf32> to vector<8x16xf32>
    %203 = arith.mulf %201, %202 : vector<8x16xf32>
    %204 = arith.addf %200, %203 : vector<8x16xf32>
    %205 = vector.extract_strided_slice %204 {offsets = [0, 8], sizes = [8, 8], strides = [1, 1]} : vector<8x16xf32> to vector<8x8xf32>
    %cst_48 = arith.constant 5.000000e-01 : f32
    %206 = vector.broadcast %cst_48 : f32 to vector<8x8xf32>
    %207 = arith.mulf %206, %205 : vector<8x8xf32>
    %208 = arith.subf %37, %207 : vector<8x8xf32>
    %cst_49 = arith.constant dense<0.000000e+00> : vector<64x8xf32>
    %209 = tpu.matmul %32, %208, %cst_49 {dimension_numbers = #tpu.dot_dimension_numbers<[1], [0], [0], [1], [0, 0, 1, 1], [], []>} : vector<64x8xf32>, vector<8x8xf32>, vector<64x8xf32> -> vector<64x8xf32>
    %cst_50 = arith.constant 2.500000e-01 : f32
    %210 = vector.broadcast %cst_50 : f32 to vector<64x8xf32>
    %211 = arith.mulf %210, %209 : vector<64x8xf32>
    %cst_51 = arith.constant dense<0.000000e+00> : vector<8x8xf32>
    %212 = tpu.matmul %32, %211, %cst_51 {dimension_numbers = #tpu.dot_dimension_numbers<[0], [0], [1], [1], [0, 1, 1, 1], [], []>} : vector<64x8xf32>, vector<64x8xf32>, vector<8x8xf32> -> vector<8x8xf32>
    %cst_52 = arith.constant dense<0.000000e+00> : vector<64x8xf32>
    %213 = tpu.matmul %45, %211, %cst_52 {dimension_numbers = #tpu.dot_dimension_numbers<[1], [0], [0], [1], [0, 0, 1, 1], [], []>} : vector<64x64xf32>, vector<64x8xf32>, vector<64x8xf32> -> vector<64x8xf32>
    %cst_53 = arith.constant 5.000000e-01 : f32
    %214 = vector.broadcast %cst_53 : f32 to vector<64x8xf32>
    %215 = arith.mulf %214, %32 : vector<64x8xf32>
    %216 = arith.subf %32, %215 : vector<64x8xf32>
    %cst_54 = arith.constant dense<0.000000e+00> : vector<64x8xf32>
    %217 = tpu.matmul %216, %212, %cst_54 {dimension_numbers = #tpu.dot_dimension_numbers<[1], [0], [0], [1], [0, 0, 1, 1], [], []>} : vector<64x8xf32>, vector<8x8xf32>, vector<64x8xf32> -> vector<64x8xf32>
    %cst_55 = arith.constant 5.000000e-01 : f32
    %218 = vector.broadcast %cst_55 : f32 to vector<64x8xf32>
    %219 = arith.mulf %218, %217 : vector<64x8xf32>
    %cst_56 = arith.constant 1.000000e+00 : f32
    %220 = vector.broadcast %cst_56 : f32 to vector<64x8xf32>
    %221 = arith.mulf %220, %213 : vector<64x8xf32>
    %222 = arith.addf %219, %221 : vector<64x8xf32>
    %cst_57 = arith.constant 5.000000e-01 : f32
    %223 = vector.broadcast %cst_57 : f32 to vector<64x8xf32>
    %224 = arith.mulf %223, %32 : vector<64x8xf32>
    %225 = arith.addf %222, %224 : vector<64x8xf32>
    %cst_58 = arith.constant dense<0.000000e+00> : vector<8x8xf32>
    %226 = tpu.matmul %225, %225, %cst_58 {dimension_numbers = #tpu.dot_dimension_numbers<[0], [0], [1], [1], [0, 1, 1, 1], [], []>} : vector<64x8xf32>, vector<64x8xf32>, vector<8x8xf32> -> vector<8x8xf32>
    %cst_59 = arith.constant 4.000000e+00 : f32
    %227 = vector.broadcast %cst_59 : f32 to vector<8x8xf32>
    %228 = arith.mulf %227, %37 : vector<8x8xf32>
    %cst_60 = arith.constant 5.000000e-01 : f32
    %229 = vector.broadcast %cst_60 : f32 to vector<8x8xf32>
    %230 = arith.mulf %229, %226 : vector<8x8xf32>
    %231 = arith.addf %228, %230 : vector<8x8xf32>
    %232 = tpu.concatenate %231, %226 in 1 : vector<8x8xf32>, vector<8x8xf32> -> vector<8x16xf32>
    %233 = vector.extract_strided_slice %37 {offsets = [0, 0], sizes = [8, 1], strides = [1, 1]} : vector<8x8xf32> to vector<8x1xf32>
    %234 = vector.extract_strided_slice %232 {offsets = [0, 0], sizes = [1, 1], strides = [1, 1]} : vector<8x16xf32> to vector<1x1xf32>
    %235 = tpu.reciprocal %234 : vector<1x1xf32> -> vector<1x1xf32>
    %236 = vector.extract_strided_slice %232 {offsets = [0, 0], sizes = [1, 16], strides = [1, 1]} : vector<8x16xf32> to vector<1x16xf32>
    %237 = vector.broadcast %235 : vector<1x1xf32> to vector<1x16xf32>
    %238 = arith.mulf %236, %237 : vector<1x16xf32>
    %239 = vector.extract_strided_slice %232 {offsets = [0, 0], sizes = [8, 1], strides = [1, 1]} : vector<8x16xf32> to vector<8x1xf32>
    %cst_61 = arith.constant 1.000000e+00 : f32
    %240 = vector.broadcast %cst_61 : f32 to vector<8x1xf32>
    %241 = arith.subf %240, %233 : vector<8x1xf32>
    %242 = arith.mulf %239, %241 : vector<8x1xf32>
    %243 = arith.subf %233, %242 : vector<8x1xf32>
    %cst_62 = arith.constant 1.000000e+00 : f32
    %244 = vector.broadcast %cst_62 : f32 to vector<8x1xf32>
    %245 = arith.subf %244, %233 : vector<8x1xf32>
    %246 = vector.broadcast %245 : vector<8x1xf32> to vector<8x16xf32>
    %247 = arith.mulf %232, %246 : vector<8x16xf32>
    %248 = vector.broadcast %243 : vector<8x1xf32> to vector<8x16xf32>
    %249 = vector.broadcast %238 : vector<1x16xf32> to vector<8x16xf32>
    %250 = arith.mulf %248, %249 : vector<8x16xf32>
    %251 = arith.addf %247, %250 : vector<8x16xf32>
    %252 = vector.extract_strided_slice %37 {offsets = [0, 1], sizes = [8, 1], strides = [1, 1]} : vector<8x8xf32> to vector<8x1xf32>
    %253 = vector.extract_strided_slice %251 {offsets = [1, 1], sizes = [1, 1], strides = [1, 1]} : vector<8x16xf32> to vector<1x1xf32>
    %254 = tpu.reciprocal %253 : vector<1x1xf32> -> vector<1x1xf32>
    %255 = vector.extract_strided_slice %251 {offsets = [1, 0], sizes = [1, 16], strides = [1, 1]} : vector<8x16xf32> to vector<1x16xf32>
    %256 = vector.broadcast %254 : vector<1x1xf32> to vector<1x16xf32>
    %257 = arith.mulf %255, %256 : vector<1x16xf32>
    %258 = vector.extract_strided_slice %251 {offsets = [0, 1], sizes = [8, 1], strides = [1, 1]} : vector<8x16xf32> to vector<8x1xf32>
    %cst_63 = arith.constant 1.000000e+00 : f32
    %259 = vector.broadcast %cst_63 : f32 to vector<8x1xf32>
    %260 = arith.subf %259, %252 : vector<8x1xf32>
    %261 = arith.mulf %258, %260 : vector<8x1xf32>
    %262 = arith.subf %252, %261 : vector<8x1xf32>
    %cst_64 = arith.constant 1.000000e+00 : f32
    %263 = vector.broadcast %cst_64 : f32 to vector<8x1xf32>
    %264 = arith.subf %263, %252 : vector<8x1xf32>
    %265 = vector.broadcast %264 : vector<8x1xf32> to vector<8x16xf32>
    %266 = arith.mulf %251, %265 : vector<8x16xf32>
    %267 = vector.broadcast %262 : vector<8x1xf32> to vector<8x16xf32>
    %268 = vector.broadcast %257 : vector<1x16xf32> to vector<8x16xf32>
    %269 = arith.mulf %267, %268 : vector<8x16xf32>
    %270 = arith.addf %266, %269 : vector<8x16xf32>
    %271 = vector.extract_strided_slice %37 {offsets = [0, 2], sizes = [8, 1], strides = [1, 1]} : vector<8x8xf32> to vector<8x1xf32>
    %272 = vector.extract_strided_slice %270 {offsets = [2, 2], sizes = [1, 1], strides = [1, 1]} : vector<8x16xf32> to vector<1x1xf32>
    %273 = tpu.reciprocal %272 : vector<1x1xf32> -> vector<1x1xf32>
    %274 = vector.extract_strided_slice %270 {offsets = [2, 0], sizes = [1, 16], strides = [1, 1]} : vector<8x16xf32> to vector<1x16xf32>
    %275 = vector.broadcast %273 : vector<1x1xf32> to vector<1x16xf32>
    %276 = arith.mulf %274, %275 : vector<1x16xf32>
    %277 = vector.extract_strided_slice %270 {offsets = [0, 2], sizes = [8, 1], strides = [1, 1]} : vector<8x16xf32> to vector<8x1xf32>
    %cst_65 = arith.constant 1.000000e+00 : f32
    %278 = vector.broadcast %cst_65 : f32 to vector<8x1xf32>
    %279 = arith.subf %278, %271 : vector<8x1xf32>
    %280 = arith.mulf %277, %279 : vector<8x1xf32>
    %281 = arith.subf %271, %280 : vector<8x1xf32>
    %cst_66 = arith.constant 1.000000e+00 : f32
    %282 = vector.broadcast %cst_66 : f32 to vector<8x1xf32>
    %283 = arith.subf %282, %271 : vector<8x1xf32>
    %284 = vector.broadcast %283 : vector<8x1xf32> to vector<8x16xf32>
    %285 = arith.mulf %270, %284 : vector<8x16xf32>
    %286 = vector.broadcast %281 : vector<8x1xf32> to vector<8x16xf32>
    %287 = vector.broadcast %276 : vector<1x16xf32> to vector<8x16xf32>
    %288 = arith.mulf %286, %287 : vector<8x16xf32>
    %289 = arith.addf %285, %288 : vector<8x16xf32>
    %290 = vector.extract_strided_slice %37 {offsets = [0, 3], sizes = [8, 1], strides = [1, 1]} : vector<8x8xf32> to vector<8x1xf32>
    %291 = vector.extract_strided_slice %289 {offsets = [3, 3], sizes = [1, 1], strides = [1, 1]} : vector<8x16xf32> to vector<1x1xf32>
    %292 = tpu.reciprocal %291 : vector<1x1xf32> -> vector<1x1xf32>
    %293 = vector.extract_strided_slice %289 {offsets = [3, 0], sizes = [1, 16], strides = [1, 1]} : vector<8x16xf32> to vector<1x16xf32>
    %294 = vector.broadcast %292 : vector<1x1xf32> to vector<1x16xf32>
    %295 = arith.mulf %293, %294 : vector<1x16xf32>
    %296 = vector.extract_strided_slice %289 {offsets = [0, 3], sizes = [8, 1], strides = [1, 1]} : vector<8x16xf32> to vector<8x1xf32>
    %cst_67 = arith.constant 1.000000e+00 : f32
    %297 = vector.broadcast %cst_67 : f32 to vector<8x1xf32>
    %298 = arith.subf %297, %290 : vector<8x1xf32>
    %299 = arith.mulf %296, %298 : vector<8x1xf32>
    %300 = arith.subf %290, %299 : vector<8x1xf32>
    %cst_68 = arith.constant 1.000000e+00 : f32
    %301 = vector.broadcast %cst_68 : f32 to vector<8x1xf32>
    %302 = arith.subf %301, %290 : vector<8x1xf32>
    %303 = vector.broadcast %302 : vector<8x1xf32> to vector<8x16xf32>
    %304 = arith.mulf %289, %303 : vector<8x16xf32>
    %305 = vector.broadcast %300 : vector<8x1xf32> to vector<8x16xf32>
    %306 = vector.broadcast %295 : vector<1x16xf32> to vector<8x16xf32>
    %307 = arith.mulf %305, %306 : vector<8x16xf32>
    %308 = arith.addf %304, %307 : vector<8x16xf32>
    %309 = vector.extract_strided_slice %37 {offsets = [0, 4], sizes = [8, 1], strides = [1, 1]} : vector<8x8xf32> to vector<8x1xf32>
    %310 = vector.extract_strided_slice %308 {offsets = [4, 4], sizes = [1, 1], strides = [1, 1]} : vector<8x16xf32> to vector<1x1xf32>
    %311 = tpu.reciprocal %310 : vector<1x1xf32> -> vector<1x1xf32>
    %312 = vector.extract_strided_slice %308 {offsets = [4, 0], sizes = [1, 16], strides = [1, 1]} : vector<8x16xf32> to vector<1x16xf32>
    %313 = vector.broadcast %311 : vector<1x1xf32> to vector<1x16xf32>
    %314 = arith.mulf %312, %313 : vector<1x16xf32>
    %315 = vector.extract_strided_slice %308 {offsets = [0, 4], sizes = [8, 1], strides = [1, 1]} : vector<8x16xf32> to vector<8x1xf32>
    %cst_69 = arith.constant 1.000000e+00 : f32
    %316 = vector.broadcast %cst_69 : f32 to vector<8x1xf32>
    %317 = arith.subf %316, %309 : vector<8x1xf32>
    %318 = arith.mulf %315, %317 : vector<8x1xf32>
    %319 = arith.subf %309, %318 : vector<8x1xf32>
    %cst_70 = arith.constant 1.000000e+00 : f32
    %320 = vector.broadcast %cst_70 : f32 to vector<8x1xf32>
    %321 = arith.subf %320, %309 : vector<8x1xf32>
    %322 = vector.broadcast %321 : vector<8x1xf32> to vector<8x16xf32>
    %323 = arith.mulf %308, %322 : vector<8x16xf32>
    %324 = vector.broadcast %319 : vector<8x1xf32> to vector<8x16xf32>
    %325 = vector.broadcast %314 : vector<1x16xf32> to vector<8x16xf32>
    %326 = arith.mulf %324, %325 : vector<8x16xf32>
    %327 = arith.addf %323, %326 : vector<8x16xf32>
    %328 = vector.extract_strided_slice %37 {offsets = [0, 5], sizes = [8, 1], strides = [1, 1]} : vector<8x8xf32> to vector<8x1xf32>
    %329 = vector.extract_strided_slice %327 {offsets = [5, 5], sizes = [1, 1], strides = [1, 1]} : vector<8x16xf32> to vector<1x1xf32>
    %330 = tpu.reciprocal %329 : vector<1x1xf32> -> vector<1x1xf32>
    %331 = vector.extract_strided_slice %327 {offsets = [5, 0], sizes = [1, 16], strides = [1, 1]} : vector<8x16xf32> to vector<1x16xf32>
    %332 = vector.broadcast %330 : vector<1x1xf32> to vector<1x16xf32>
    %333 = arith.mulf %331, %332 : vector<1x16xf32>
    %334 = vector.extract_strided_slice %327 {offsets = [0, 5], sizes = [8, 1], strides = [1, 1]} : vector<8x16xf32> to vector<8x1xf32>
    %cst_71 = arith.constant 1.000000e+00 : f32
    %335 = vector.broadcast %cst_71 : f32 to vector<8x1xf32>
    %336 = arith.subf %335, %328 : vector<8x1xf32>
    %337 = arith.mulf %334, %336 : vector<8x1xf32>
    %338 = arith.subf %328, %337 : vector<8x1xf32>
    %cst_72 = arith.constant 1.000000e+00 : f32
    %339 = vector.broadcast %cst_72 : f32 to vector<8x1xf32>
    %340 = arith.subf %339, %328 : vector<8x1xf32>
    %341 = vector.broadcast %340 : vector<8x1xf32> to vector<8x16xf32>
    %342 = arith.mulf %327, %341 : vector<8x16xf32>
    %343 = vector.broadcast %338 : vector<8x1xf32> to vector<8x16xf32>
    %344 = vector.broadcast %333 : vector<1x16xf32> to vector<8x16xf32>
    %345 = arith.mulf %343, %344 : vector<8x16xf32>
    %346 = arith.addf %342, %345 : vector<8x16xf32>
    %347 = vector.extract_strided_slice %37 {offsets = [0, 6], sizes = [8, 1], strides = [1, 1]} : vector<8x8xf32> to vector<8x1xf32>
    %348 = vector.extract_strided_slice %346 {offsets = [6, 6], sizes = [1, 1], strides = [1, 1]} : vector<8x16xf32> to vector<1x1xf32>
    %349 = tpu.reciprocal %348 : vector<1x1xf32> -> vector<1x1xf32>
    %350 = vector.extract_strided_slice %346 {offsets = [6, 0], sizes = [1, 16], strides = [1, 1]} : vector<8x16xf32> to vector<1x16xf32>
    %351 = vector.broadcast %349 : vector<1x1xf32> to vector<1x16xf32>
    %352 = arith.mulf %350, %351 : vector<1x16xf32>
    %353 = vector.extract_strided_slice %346 {offsets = [0, 6], sizes = [8, 1], strides = [1, 1]} : vector<8x16xf32> to vector<8x1xf32>
    %cst_73 = arith.constant 1.000000e+00 : f32
    %354 = vector.broadcast %cst_73 : f32 to vector<8x1xf32>
    %355 = arith.subf %354, %347 : vector<8x1xf32>
    %356 = arith.mulf %353, %355 : vector<8x1xf32>
    %357 = arith.subf %347, %356 : vector<8x1xf32>
    %cst_74 = arith.constant 1.000000e+00 : f32
    %358 = vector.broadcast %cst_74 : f32 to vector<8x1xf32>
    %359 = arith.subf %358, %347 : vector<8x1xf32>
    %360 = vector.broadcast %359 : vector<8x1xf32> to vector<8x16xf32>
    %361 = arith.mulf %346, %360 : vector<8x16xf32>
    %362 = vector.broadcast %357 : vector<8x1xf32> to vector<8x16xf32>
    %363 = vector.broadcast %352 : vector<1x16xf32> to vector<8x16xf32>
    %364 = arith.mulf %362, %363 : vector<8x16xf32>
    %365 = arith.addf %361, %364 : vector<8x16xf32>
    %366 = vector.extract_strided_slice %37 {offsets = [0, 7], sizes = [8, 1], strides = [1, 1]} : vector<8x8xf32> to vector<8x1xf32>
    %367 = vector.extract_strided_slice %365 {offsets = [7, 7], sizes = [1, 1], strides = [1, 1]} : vector<8x16xf32> to vector<1x1xf32>
    %368 = tpu.reciprocal %367 : vector<1x1xf32> -> vector<1x1xf32>
    %369 = vector.extract_strided_slice %365 {offsets = [7, 0], sizes = [1, 16], strides = [1, 1]} : vector<8x16xf32> to vector<1x16xf32>
    %370 = vector.broadcast %368 : vector<1x1xf32> to vector<1x16xf32>
    %371 = arith.mulf %369, %370 : vector<1x16xf32>
    %372 = vector.extract_strided_slice %365 {offsets = [0, 7], sizes = [8, 1], strides = [1, 1]} : vector<8x16xf32> to vector<8x1xf32>
    %cst_75 = arith.constant 1.000000e+00 : f32
    %373 = vector.broadcast %cst_75 : f32 to vector<8x1xf32>
    %374 = arith.subf %373, %366 : vector<8x1xf32>
    %375 = arith.mulf %372, %374 : vector<8x1xf32>
    %376 = arith.subf %366, %375 : vector<8x1xf32>
    %cst_76 = arith.constant 1.000000e+00 : f32
    %377 = vector.broadcast %cst_76 : f32 to vector<8x1xf32>
    %378 = arith.subf %377, %366 : vector<8x1xf32>
    %379 = vector.broadcast %378 : vector<8x1xf32> to vector<8x16xf32>
    %380 = arith.mulf %365, %379 : vector<8x16xf32>
    %381 = vector.broadcast %376 : vector<8x1xf32> to vector<8x16xf32>
    %382 = vector.broadcast %371 : vector<1x16xf32> to vector<8x16xf32>
    %383 = arith.mulf %381, %382 : vector<8x16xf32>
    %384 = arith.addf %380, %383 : vector<8x16xf32>
    %385 = vector.extract_strided_slice %384 {offsets = [0, 8], sizes = [8, 8], strides = [1, 1]} : vector<8x16xf32> to vector<8x8xf32>
    %cst_77 = arith.constant 5.000000e-01 : f32
    %386 = vector.broadcast %cst_77 : f32 to vector<8x8xf32>
    %387 = arith.mulf %386, %385 : vector<8x8xf32>
    %388 = arith.subf %37, %387 : vector<8x8xf32>
    %cst_78 = arith.constant dense<0.000000e+00> : vector<64x8xf32>
    %389 = tpu.matmul %225, %388, %cst_78 {dimension_numbers = #tpu.dot_dimension_numbers<[1], [0], [0], [1], [0, 0, 1, 1], [], []>} : vector<64x8xf32>, vector<8x8xf32>, vector<64x8xf32> -> vector<64x8xf32>
    %cst_79 = arith.constant 2.500000e-01 : f32
    %390 = vector.broadcast %cst_79 : f32 to vector<64x8xf32>
    %391 = arith.mulf %390, %389 : vector<64x8xf32>
    %cst_80 = arith.constant dense<0.000000e+00> : vector<8x8xf32>
    %392 = tpu.matmul %225, %391, %cst_80 {dimension_numbers = #tpu.dot_dimension_numbers<[0], [0], [1], [1], [0, 1, 1, 1], [], []>} : vector<64x8xf32>, vector<64x8xf32>, vector<8x8xf32> -> vector<8x8xf32>
    %cst_81 = arith.constant dense<0.000000e+00> : vector<64x8xf32>
    %393 = tpu.matmul %45, %391, %cst_81 {dimension_numbers = #tpu.dot_dimension_numbers<[1], [0], [0], [1], [0, 0, 1, 1], [], []>} : vector<64x64xf32>, vector<64x8xf32>, vector<64x8xf32> -> vector<64x8xf32>
    %cst_82 = arith.constant 5.000000e-01 : f32
    %394 = vector.broadcast %cst_82 : f32 to vector<64x8xf32>
    %395 = arith.mulf %394, %32 : vector<64x8xf32>
    %396 = arith.subf %225, %395 : vector<64x8xf32>
    %cst_83 = arith.constant dense<0.000000e+00> : vector<64x8xf32>
    %397 = tpu.matmul %396, %392, %cst_83 {dimension_numbers = #tpu.dot_dimension_numbers<[1], [0], [0], [1], [0, 0, 1, 1], [], []>} : vector<64x8xf32>, vector<8x8xf32>, vector<64x8xf32> -> vector<64x8xf32>
    %cst_84 = arith.constant 5.000000e-01 : f32
    %398 = vector.broadcast %cst_84 : f32 to vector<64x8xf32>
    %399 = arith.mulf %398, %397 : vector<64x8xf32>
    %cst_85 = arith.constant 1.000000e+00 : f32
    %400 = vector.broadcast %cst_85 : f32 to vector<64x8xf32>
    %401 = arith.mulf %400, %393 : vector<64x8xf32>
    %402 = arith.addf %399, %401 : vector<64x8xf32>
    %cst_86 = arith.constant 5.000000e-01 : f32
    %403 = vector.broadcast %cst_86 : f32 to vector<64x8xf32>
    %404 = arith.mulf %403, %32 : vector<64x8xf32>
    %405 = arith.addf %402, %404 : vector<64x8xf32>
    %cst_87 = arith.constant dense<0xFF800000> : vector<64xf32>
    %406 = vector.multi_reduction <maximumf>, %405, %cst_87 [1] : vector<64x8xf32> to vector<64xf32>
    %407 = vector.shape_cast %406 : vector<64xf32> to vector<64x1xf32>
    %408 = vector.broadcast %407 : vector<64x1xf32> to vector<64x8xf32>
    %409 = arith.subf %405, %408 : vector<64x8xf32>
    %410 = math.exp %409 : vector<64x8xf32>
    %cst_88 = arith.constant dense<0.000000e+00> : vector<64xf32>
    %411 = vector.multi_reduction <add>, %410, %cst_88 [1] : vector<64x8xf32> to vector<64xf32>
    %412 = vector.shape_cast %411 : vector<64xf32> to vector<64x1xf32>
    %413 = math.log %412 : vector<64x1xf32>
    %414 = vector.broadcast %413 : vector<64x1xf32> to vector<64x8xf32>
    %415 = arith.subf %409, %414 : vector<64x8xf32>
    %416 = tpu.reciprocal %412 : vector<64x1xf32> -> vector<64x1xf32>
    %417 = vector.broadcast %416 : vector<64x1xf32> to vector<64x8xf32>
    %418 = arith.mulf %410, %417 : vector<64x8xf32>
    %419 = tpu.concatenate %415, %418 in 1 : vector<64x8xf32>, vector<64x8xf32> -> vector<64x16xf32>
    %c0_89 = arith.constant 0 : index
    %c0_90 = arith.constant 0 : index
    %c0_91 = arith.constant 0 : index
    %420 = vector.load %arg11[%c0_89, %c0_90, %c0_91] : memref<1x64x16xf32, #tpu.memory_space<vmem>>, vector<1x64x16xf32>
    %421 = vector.shape_cast %420 : vector<1x64x16xf32> to vector<64x16xf32>
    %422 = vector.shape_cast %419 : vector<64x16xf32> to vector<1x64x16xf32>
    tpu.vector_store %arg11[%c0_89, %c0_90, %c0_91], %422 {strides = array<i32>} : memref<1x64x16xf32, #tpu.memory_space<vmem>>, vector<1x64x16xf32>,
    return
  }
  func.func @transform_0(%arg0: i32) -> (i32, i32, i32) {
    %c0_i32 = arith.constant 0 : i32
    %c0_i32_0 = arith.constant 0 : i32
    %c0_i32_1 = arith.constant 0 : i32
    return %arg0, %c0_i32, %c0_i32_0 : i32, i32, i32
  }
  func.func @transform_1(%arg0: i32) -> (i32, i32, i32) {
    %c0_i32 = arith.constant 0 : i32
    %c0_i32_0 = arith.constant 0 : i32
    %c0_i32_1 = arith.constant 0 : i32
    return %arg0, %c0_i32, %c0_i32_0 : i32, i32, i32
  }
  func.func @transform_2(%arg0: i32) -> (i32, i32) {
    %c0_i32 = arith.constant 0 : i32
    %c0_i32_0 = arith.constant 0 : i32
    %c0_i32_1 = arith.constant 0 : i32
    return %c0_i32, %c0_i32_0 : i32, i32
  }
  func.func @transform_3(%arg0: i32) -> (i32, i32) {
    %c0_i32 = arith.constant 0 : i32
    %c0_i32_0 = arith.constant 0 : i32
    %c0_i32_1 = arith.constant 0 : i32
    return %c0_i32, %c0_i32_0 : i32, i32
  }
  func.func @transform_4(%arg0: i32) -> (i32, i32) {
    %c0_i32 = arith.constant 0 : i32
    %c0_i32_0 = arith.constant 0 : i32
    %c0_i32_1 = arith.constant 0 : i32
    return %c0_i32, %c0_i32_0 : i32, i32
  }
  func.func @transform_5(%arg0: i32) -> (i32, i32) {
    %c0_i32 = arith.constant 0 : i32
    %c0_i32_0 = arith.constant 0 : i32
    %c0_i32_1 = arith.constant 0 : i32
    return %c0_i32, %c0_i32_0 : i32, i32
  }
  func.func @transform_6(%arg0: i32) -> (i32, i32) {
    %c0_i32 = arith.constant 0 : i32
    %c0_i32_0 = arith.constant 0 : i32
    %c0_i32_1 = arith.constant 0 : i32
    return %c0_i32, %c0_i32_0 : i32, i32
  }
  func.func @transform_7(%arg0: i32) -> (i32, i32) {
    %c0_i32 = arith.constant 0 : i32
    %c0_i32_0 = arith.constant 0 : i32
    %c0_i32_1 = arith.constant 0 : i32
    return %c0_i32, %c0_i32_0 : i32, i32
  }
  func.func @transform_8(%arg0: i32) -> (i32, i32) {
    %c0_i32 = arith.constant 0 : i32
    %c0_i32_0 = arith.constant 0 : i32
    %c0_i32_1 = arith.constant 0 : i32
    return %c0_i32, %c0_i32_0 : i32, i32
  }
  func.func @transform_9(%arg0: i32) -> (i32, i32) {
    %c0_i32 = arith.constant 0 : i32
    %c0_i32_0 = arith.constant 0 : i32
    %c0_i32_1 = arith.constant 0 : i32
    return %c0_i32, %c0_i32_0 : i32, i32
  }
  func.func @transform_10(%arg0: i32) -> (i32, i32, i32) {
    %c0_i32 = arith.constant 0 : i32
    %c0_i32_0 = arith.constant 0 : i32
    %c0_i32_1 = arith.constant 0 : i32
    return %arg0, %c0_i32, %c0_i32_0 : i32, i32, i32
  }
}

</mosaic_0001>

<bundles_post_ra>
// kernel: glognn_forward.1
= control target key start
LH: loop header
LB: loop body
LE: loop exit
PB: predicated region body
PF: predicated region fallthrough
CT: control target
= control target key end

     0   :  { %s2660_s13 = smov 0   ;;  %s3448_s0 = inlined_call_operand.vmem [shape: f32[2,64,32], index: 0, kind: input, shape index: {}]   ;;  %s3449_s1 = inlined_call_operand.vmem [shape: f32[2,64,64], index: 1, kind: input, shape index: {}]   ;;  %s3450_s2 = inlined_call_operand.vmem [shape: f32[32,32], index: 2, kind: input, shape index: {}]   ;;  %s3451_s3 = inlined_call_operand.vmem [shape: f32[1,32], index: 3, kind: input, shape index: {}]   ;;  %s3452_s4 = inlined_call_operand.vmem [shape: f32[64,32], index: 4, kind: input, shape index: {}]   ;;  %s3453_s5 = inlined_call_operand.vmem [shape: f32[1,32], index: 5, kind: input, shape index: {}]   ;;  %s3454_s6 = inlined_call_operand.vmem [shape: f32[32,32], index: 6, kind: input, shape index: {}]   ;;  %s3455_s7 = inlined_call_operand.vmem [shape: f32[1,32], index: 7, kind: input, shape index: {}]   ;;  %s3456_s8 = inlined_call_operand.vmem [shape: f32[32,8], index: 8, kind: input, shape index: {}]   ;;  %s3457_s9 = inlined_call_operand.vmem [shape: f32[1,8], index: 9, kind: input, shape index: {}]   ;;  %s3458_s10 = inlined_call_operand.vmem [shape: f32[2,64,16], index: 10, kind: output, shape index: {}]  }
   0x1 LB: > { %s2320_s14 = sadd.s32 4294967295, %s2592_s13   ;;  %p2324_p0 = scmp.ge.s32.totalorder %s2592_s13, 1  ;;  %s2592_s13 = sphi %s2660_s13, %s20_s13  }
   0x2   : > { %p322_p1 = scmp.lt.s32.totalorder %s2592_s13, 3 }
   0x4   : > { %p323_p2 = pnand %p2324_p0, %p322_p1 }
   0x5   : > { %p365_p3 = scmp.lt.s32.totalorder (!%p323_p2), %s2320_s14, 1  ;;  %s2604_s17 = smov (!%p323_p2), 120  }
   0x6   : > { %326 = sbr.rel (%p323_p2) target bundleno = 5092 (0x13e4), region = 60 }
   0xb   : > { %v399_v0 = vld [vmem:[%s3450_s2 + $0x18] sm:$0xff]  ;;  %v398_v1 = vld [vmem:[%s3450_s2 + $0x10] sm:$0xff]  ;;  %v397_v4 = vld [vmem:[%s3450_s2 + $0x8] sm:$0xff]  ;;  %s3460_s14 = smov (!%p365_p3, %s2320_s14), 1  ;;  %vm404_vm0 = vcmask 261120   ;;  %vm482_vm1 = vcmask 523264  }
   0xc   : > { %441 = vmatpush.msra.mxu0 %v399_v0  ;;  %v477_v2 = vld [vmem:[%s3452_s4 + $0x38] sm:$0xff]  ;;  %v476_v3 = vld [vmem:[%s3452_s4 + $0x30] sm:$0xff]  ;;  %v475_v5 = vld [vmem:[%s3452_s4 + $0x28] sm:$0xff]  ;;  %s2689_s29 = sshll.u32 %s3460_s14, 6  ;;  %s2596_s14 = smov 8   ;;  %vm888_vm3 = vcmask 64512  }
   0xd   : > { %2436 = vmatpush.msra.mxu1 %v477_v2  ;;  %v396_v6 = vld [vmem:[%s3450_s2] sm:$0xff]  ;;  %s2695_s12 = scalar_lea.vmem %s3448_s0, %s2689_s29  ;;  %v473_v9 = vld [vmem:[%s3452_s4 + $0x18] sm:$0xff]  ;;  %v472_v10 = vld [vmem:[%s3452_s4 + $0x10] sm:$0xff]  ;;  %s2715_s24 = scalar_lea.vmem %s3449_s1, %s2689_s29 }
   0xe   : > { %442 = vmatpush.msra.mxu0 %v398_v1  ;;  %v474_v7 = vld [vmem:[%s3452_s4 + $0x20] sm:$0xff]  ;;  %v471_v11 = vld [vmem:[%s3452_s4 + $0x8] sm:$0xff]  ;;  %v2722_v14 = vld [vmem:[%s2715_s24 + $0x10] sm:$0xff]  ;;  %s3406_s19 = scalar_lea.vmem %s3458_s10, %s2689_s29 }
   0xf   : > { %2437 = vmatpush.msra.mxu1 %v476_v3  ;;  %v380_v8 = vld [vmem:[%s2695_s12] sm:$0xff]  ;;  %v381_v12 = vld [vmem:[%s2695_s12 + $0x8] sm:$0xff]  ;;  %v382_v15 = vld [vmem:[%s2695_s12 + $0x10] sm:$0xff] }
  0x10   : > { %443 = vmatpush.msra.mxu0 %v397_v4  ;;  %v470_v13 = vld [vmem:[%s3452_s4] sm:$0xff]  ;;  %v2729_v16 = vld [vmem:[%s2715_s24 + $0x18] sm:$0xff]  ;;  %v2743_v20 = vld [vmem:[%s2715_s24 + $0x28] sm:$0xff] }
  0x11   : > { %2438 = vmatpush.msra.mxu1 %v475_v5  ;;  %v383_v17 = vld [vmem:[%s2695_s12 + $0x18] sm:$0xff]  ;;  %v2736_v18 = vld [vmem:[%s2715_s24 + $0x20] sm:$0xff]  ;;  %v385_v21 = vld [vmem:[%s2695_s12 + $0x28] sm:$0xff] }
  0x12   : > { %444 = vmatpush.msra.mxu0 %v396_v6  ;;  %v384_v19 = vld [vmem:[%s2695_s12 + $0x20] sm:$0xff]  ;;  %v2750_v22 = vld [vmem:[%s2715_s24 + $0x30] sm:$0xff]  ;;  %v2757_v24 = vld [vmem:[%s2715_s24 + $0x38] sm:$0xff] }
  0x13   : > { %2331 = vmatmul.msk.f32.vlgmr.msra.gmra.mxu0 %vm404_vm0, %v380_v8  ;;  %2439 = vmatpush.msra.mxu1 %v474_v7  ;;  %v386_v23 = vld [vmem:[%s2695_s12 + $0x30] sm:$0xff]  ;;  %v387_v25 = vld [vmem:[%s2695_s12 + $0x38] sm:$0xff]  ;;  %v2765_v26 = vld [vmem:[%s2715_s24] sm:$0xff] }
  0x14   : > { %515 = vmatpush.msrb.mxu0 %v477_v2  ;;  %v2770_v27 = vld [vmem:[%s2715_s24 + $0x8] sm:$0xff]  ;;  %v583_v28 = vld [vmem:[%s3454_s6 + $0x18] sm:$0xff]  ;;  %v582_v29 = vld [vmem:[%s3454_s6 + $0x10] sm:$0xff] }
  0x15   : > { %2440 = vmatpush.msra.mxu1 %v473_v9  ;;  %2444 = vmatpush.msra.mxu2 %v583_v28  ;;  %v581_v30 = vld [vmem:[%s3454_s6 + $0x8] sm:$0xff]  ;;  %v580_v31 = vld [vmem:[%s3454_s6] sm:$0xff] }
  0x16   : > { %516 = vmatpush.msrb.mxu0 %v476_v3  ;;  %v2799_v34 = vld [vmem:[%s3453_s5] ss:$0 sm:$0xff] }
  0x17   : > { %2441 = vmatpush.msra.mxu1 %v472_v10  ;;  %2445 = vmatpush.msra.mxu2 %v582_v29  ;;  %v2496_v37 = vld [vmem:[%s3451_s3] ss:$0 sm:$0xff] }
  0x18   : > { %517 = vmatpush.msrb.mxu0 %v475_v5 }
  0x19   : > { %2442 = vmatpush.msra.mxu1 %v471_v11  ;;  %2446 = vmatpush.msra.mxu2 %v581_v30 }
  0x1a   : > { %518 = vmatpush.msrb.mxu0 %v474_v7 }
  0x1b   : > { %2332 = vmatmul.msk.f32.gmra.mxu0 %vm404_vm0, %v381_v12  ;;  %2443 = vmatpush.msra.mxu1 %v470_v13 }
  0x1c   : > { %2341 = vmatmul.msk.f32.vlgmr.msra.gmra.mxu1 %vm482_vm1, %v2722_v14  ;;  %519 = vmatpush.msrb.mxu0 %v473_v9 }
  0x1d   : > { %2447 = vmatpush.msra.mxu2 %v580_v31 }
  0x1e   : > { %520 = vmatpush.msrb.mxu0 %v472_v10 }
  0x20   : > { %521 = vmatpush.msrb.mxu0 %v471_v11 }
  0x22   : > { %522 = vmatpush.msrb.mxu0 %v470_v13 }
  0x23   : > { %2333 = vmatmul.msk.f32.gmra.mxu0 %vm404_vm0, %v382_v15 }
  0x24   : > { %2342 = vmatmul.msk.f32.gmra.mxu1 %vm482_vm1, %v2729_v16  ;;  %624 = vmatpush.msra.mxu0 %v583_v28 }
  0x26   : > { %625 = vmatpush.msra.mxu0 %v582_v29 }
  0x28   : > { %626 = vmatpush.msra.mxu0 %v581_v30 }
  0x2a   : > { %627 = vmatpush.msra.mxu0 %v580_v31 }
  0x2b   : > { %2334 = vmatmul.msk.f32.gmra.mxu0 %vm404_vm0, %v383_v17 }
  0x2c   : > { %2343 = vmatmul.msk.f32.gmra.mxu1 %vm482_vm1, %v2736_v18 }
  0x33   : > { %2335 = vmatmul.msk.f32.gmra.mxu0 %vm404_vm0, %v384_v19 }
  0x34   : > { %2344 = vmatmul.msk.f32.gmra.mxu1 %vm482_vm1, %v2743_v20 }
  0x3b   : > { %2336 = vmatmul.msk.f32.gmra.mxu0 %vm404_vm0, %v385_v21 }
  0x3c   : > { %2345 = vmatmul.msk.f32.gmra.mxu1 %vm482_vm1, %v2750_v22 }
  0x43   : > { %2337 = vmatmul.msk.f32.gmra.mxu0 %vm404_vm0, %v386_v23 }
  0x44   : > { %2346 = vmatmul.msk.f32.gmra.mxu1 %vm482_vm1, %v2757_v24 }
  0x4b   : > { %2338 = vmatmul.msk.f32.gmra.mxu0 %vm404_vm0, %v387_v25 }
  0x53   : > { %2339 = vmatmul.msk.f32.vlgmr.msrb.gmra.mxu0 %vm482_vm1, %v2765_v26 }
  0x54   : > { %785 = vmatpush.msrb.mxu0 %v2757_v24 }
  0x56   : > { %786 = vmatpush.msrb.mxu0 %v2750_v22 }
  0x58   : > { %787 = vmatpush.msrb.mxu0 %v2743_v20 }
  0x5a   : > { %788 = vmatpush.msrb.mxu0 %v2736_v18 }
  0x5b   : > { %2340 = vmatmul.msk.f32.gmra.mxu0 %vm482_vm1, %v2770_v27 }
  0x5c   : > { %789 = vmatpush.msrb.mxu0 %v2729_v16 }
  0x5e   : > { %790 = vmatpush.msrb.mxu0 %v2722_v14 }
  0x60   : > { %791 = vmatpush.msrb.mxu0 %v2770_v27 }
  0x62   : > { %792 = vmatpush.msrb.mxu0 %v2765_v26 }
  0x90   : > { %v446_v32 = vpop.f32.mrf.mxu0 }
  0x91   : > { %v447_v25 = vadd.f32 %v2496_v37, %v446_v32 }
  0x93   : > { %v548_v31 = vmul.f32 0.5, %v447_v25  ;;  %v734_v25 = vlaneseq }
  0x98   : > { %v2794_v33 = vpop.f32.mrf.mxu0 }
  0x99   : > { %v530_v35 = vpop.f32.mrf.mxu1 }
  0x9a   : > { %v531_v36 = vadd.f32 %v2799_v34, %v530_v35 }
  0x9c   : > { %v558_v40 = vmul.f32 0.5, %v531_v36 }
  0xa0   : > { %v452_v38 = vpop.f32.mrf.mxu0 }
  0xa1   : > { %v453_v39 = vadd.f32 %v2496_v37, %v452_v38  ;;  %v533_v41 = vpop.f32.mrf.mxu1  ;;  %v450_v38 = vadd.f32 %v2496_v37, %v2794_v33  ;;  %v664_v33 = vld [vmem:[%s3456_s8 + $0x18] sm:$0xff] }
  0xa2   : > { %v534_v44 = vadd.f32 %v2799_v34, %v533_v41  ;;  %705 = vmatpush.msra.mxu3 %v664_v33 }
  0xa3   : > { %v550_v42 = vmul.f32 0.5, %v453_v39 }
  0xa4   : > { %v559_v48 = vmul.f32 0.5, %v534_v44 }
  0xa5   : > { %v566_v43 = vadd.f32 %v558_v40, %v550_v42  ;;  %v549_v42 = vmul.f32 0.5, %v450_v38 }
  0xa7   : > { %v574_v45 = vmax.f32 %v566_v43, 0.0 }
  0xa8   : > { %v455_v46 = vpop.f32.mrf.mxu0 }
  0xa9   : > { %v456_v47 = vadd.f32 %v2496_v37, %v455_v46  ;;  %2349 = vmatmul.msk.f32.vlgmr.msra.gmra.mxu2 %vm404_vm0, %v574_v45  ;;  %v536_v49 = vpop.f32.mrf.mxu1 }
  0xaa   : > { %v537_v52 = vadd.f32 %v2799_v34, %v536_v49 }
  0xab   : > { %v551_v50 = vmul.f32 0.5, %v456_v47 }
  0xac   : > { %v560_v56 = vmul.f32 0.5, %v537_v52 }
  0xad   : > { %v567_v51 = vadd.f32 %v559_v48, %v551_v50 }
  0xaf   : > { %v575_v53 = vmax.f32 %v567_v51, 0.0 }
  0xb0   : > { %v458_v54 = vpop.f32.mrf.mxu0 }
  0xb1   : > { %v459_v55 = vadd.f32 %v2496_v37, %v458_v54  ;;  %2350 = vmatmul.msk.f32.gmra.mxu2 %vm404_vm0, %v575_v53  ;;  %v539_v57 = vpop.f32.mrf.mxu1 }
  0xb2   : > { %v540_v60 = vadd.f32 %v2799_v34, %v539_v57 }
  0xb3   : > { %v552_v58 = vmul.f32 0.5, %v459_v55 }
  0xb4   : > { %v561_v0 = vmul.f32 0.5, %v540_v60 }
  0xb5   : > { %v568_v59 = vadd.f32 %v560_v56, %v552_v58 }
  0xb7   : > { %v576_v61 = vmax.f32 %v568_v59, 0.0 }
  0xb8   : > { %v461_v62 = vpop.f32.mrf.mxu0 }
  0xb9   : > { %v462_v63 = vadd.f32 %v2496_v37, %v461_v62  ;;  %2351 = vmatmul.msk.f32.gmra.mxu2 %vm404_vm0, %v576_v61  ;;  %v542_v1 = vpop.f32.mrf.mxu1 }
  0xba   : > { %v543_v4 = vadd.f32 %v2799_v34, %v542_v1  ;;  %v2499_v1 = vld [vmem:[%s3457_s9] ss:$0 sm:$0xff] }
  0xbb   : > { %v553_v2 = vmul.f32 0.5, %v462_v63 }
  0xbc   : > { %v562_v8 = vmul.f32 0.5, %v543_v4 }
  0xbd   : > { %v569_v3 = vadd.f32 %v561_v0, %v553_v2 }
  0xbf   : > { %v577_v5 = vmax.f32 %v569_v3, 0.0 }
  0xc0   : > { %v464_v6 = vpop.f32.mrf.mxu0 }
  0xc1   : > { %v465_v7 = vadd.f32 %v2496_v37, %v464_v6  ;;  %2352 = vmatmul.msk.f32.gmra.mxu2 %vm404_vm0, %v577_v5  ;;  %v545_v9 = vpop.f32.mrf.mxu1 }
  0xc2   : > { %v546_v12 = vadd.f32 %v2799_v34, %v545_v9 }
  0xc3   : > { %v554_v10 = vmul.f32 0.5, %v465_v7 }
  0xc4   : > { %v563_v19 = vmul.f32 0.5, %v546_v12 }
  0xc5   : > { %v570_v11 = vadd.f32 %v562_v8, %v554_v10 }
  0xc7   : > { %v578_v13 = vmax.f32 %v570_v11, 0.0 }
  0xc8   : > { %v467_v15 = vpop.f32.mrf.mxu0 }
  0xc9   : > { %v468_v17 = vadd.f32 %v2496_v37, %v467_v15  ;;  %2353 = vmatmul.msk.f32.gmra.mxu2 %vm404_vm0, %v578_v13 }
  0xcb   : > { %v555_v21 = vmul.f32 0.5, %v468_v17 }
  0xcd   : > { %v571_v23 = vadd.f32 %v563_v19, %v555_v21 }
  0xcf   : > { %v579_v28 = vmax.f32 %v571_v23, 0.0 }
  0xd0   : > { %v524_v29 = vpop.f32.mrf.mxu0 }
  0xd1   : > { %v525_v30 = vadd.f32 %v2799_v34, %v524_v29  ;;  %2354 = vmatmul.msk.f32.gmra.mxu2 %vm404_vm0, %v579_v28  ;;  %v2899_v28 = vshrl.u32 %v734_v25, 7  ;;  %v2901_v29 = vand.u32 127, %v734_v25 }
  0xd3   : > { %v556_v35 = vmul.f32 0.5, %v525_v30  ;;  %vm738_vm2 = vcmp.eq.s32.totalorder %v2899_v28, %v2901_v29  ;;  %v2594_v30 = vmov 0.0  }
  0xd5   : > { %v564_v36 = vadd.f32 %v556_v35, %v548_v31  ;;  %v2906_v31 = vsel %vm738_vm2, 1.0, %v2594_v30 }
  0xd6   : > { %v2909_v35 = vsub.f32 1.0, %v2906_v31 }
  0xd7   : > { %v572_v39 = vmax.f32 %v564_v36, 0.0  ;;  %v2595_v36 = vmov 0  }
  0xd8   : > { %v527_v40 = vpop.f32.mrf.mxu0  ;;  %2468 = vset.pattern.permute.xlu2 %v2595_v36  ;;  %2467 = vset.pattern.permute.xlu1 %v2595_v36 }
  0xd9   : > { %v528_v41 = vadd.f32 %v2799_v34, %v527_v40  ;;  %2347 = vmatmul.msk.f32.vlgmr.msra.gmra.mxu0 %vm404_vm0, %v572_v39  ;;  %915 = vperm.xlu2 %2468, %v2909_v35   ;;  %v2916_v39 = vmul.f32 4.0, %v2906_v31 }
  0xdb   : > { %v557_v43 = vmul.f32 0.5, %v528_v41 }
  0xdd   : > { %v565_v32 = vadd.f32 %v557_v43, %v549_v42 }
  0xdf   : > { %v573_v44 = vmax.f32 %v565_v32, 0.0 }
  0xe1   : > { %2348 = vmatmul.msk.f32.gmra.mxu0 %vm404_vm0, %v573_v44 }
  0xe9   : > { %2371 = vmatmul.msk.f32.vlgmr.msrb.gmra.mxu0 %vm482_vm1, %v2765_v26 }
  0xf1   : > { %2372 = vmatmul.msk.f32.gmra.mxu0 %vm482_vm1, %v2770_v27 }
  0xf9   : > { %2373 = vmatmul.msk.f32.gmra.mxu0 %vm482_vm1, %v2722_v14  ;;  %v663_v14 = vld [vmem:[%s3456_s8 + $0x10] sm:$0xff] }
  0xfa   : > { %706 = vmatpush.msra.mxu3 %v663_v14 }
 0x101   : > { %2374 = vmatmul.msk.f32.gmra.mxu0 %vm482_vm1, %v2729_v16  ;;  %v662_v16 = vld [vmem:[%s3456_s8 + $0x8] sm:$0xff] }
 0x102   : > { %707 = vmatpush.msra.mxu3 %v662_v16 }
 0x109   : > { %2375 = vmatmul.msk.f32.gmra.mxu0 %vm482_vm1, %v2736_v18  ;;  %v661_v18 = vld [vmem:[%s3456_s8] sm:$0xff] }
 0x10a   : > { %708 = vmatpush.msra.mxu3 %v661_v18 }
 0x111   : > { %2376 = vmatmul.msk.f32.gmra.mxu0 %vm482_vm1, %v2743_v20  ;;  %v2498_v20 = vld [vmem:[%s3455_s7] ss:$0 sm:$0xff] }
 0x119   : > { %2377 = vmatmul.msk.f32.gmra.mxu0 %vm482_vm1, %v2750_v22 }
 0x121   : > { %2378 = vmatmul.msk.f32.gmra.mxu0 %vm482_vm1, %v2757_v24 }
 0x12c   : > { %v635_v34 = vpop.f32.mrf.mxu2 }
 0x12d   : > { %v636_v49 = vadd.f32 %v2498_v20, %v635_v34 }
 0x12f   : > { %v655_v50 = vmax.f32 %v636_v49, 0.0 }
 0x134   : > { %v638_v48 = vpop.f32.mrf.mxu2 }
 0x135   : > { %v639_v52 = vadd.f32 %v2498_v20, %v638_v48 }
 0x137   : > { %v656_v53 = vmax.f32 %v639_v52, 0.0 }
 0x13c   : > { %v641_v51 = vpop.f32.mrf.mxu2 }
 0x13d   : > { %v642_v54 = vadd.f32 %v2498_v20, %v641_v51  ;;  %v2598_v51 = vmov 2  }
 0x13f   : > { %v657_v56 = vmax.f32 %v642_v54, 0.0 }
 0x144   : > { %v644_v55 = vpop.f32.mrf.mxu2 }
 0x145   : > { %v645_v57 = vadd.f32 %v2498_v20, %v644_v55 }
 0x147   : > { %v658_v59 = vmax.f32 %v645_v57, 0.0 }
 0x14c   : > { %v647_v58 = vpop.f32.mrf.mxu2 }
 0x14d   : > { %v648_v60 = vadd.f32 %v2498_v20, %v647_v58 }
 0x14f   : > { %v659_v61 = vmax.f32 %v648_v60, 0.0 }
 0x154   : > { %v650_v62 = vpop.f32.mrf.mxu2 }
 0x155   : > { %v651_v63 = vadd.f32 %v2498_v20, %v650_v62 }
 0x156   : > { %v629_v22 = vpop.f32.mrf.mxu0 }
 0x157   : > { %v630_v24 = vadd.f32 %v2498_v20, %v629_v22  ;;  %v660_v0 = vmax.f32 %v651_v63, 0.0 }
 0x159   : > { %v653_v37 = vmax.f32 %v630_v24, 0.0  ;;  %v2597_v24 = vmov 1  }
 0x15b   : > { %2355 = vmatmul.msk.f32.vlgmr.msra.gmra.mxu3 %vm404_vm0, %v653_v37 }
 0x15e   : > { %v632_v45 = vpop.f32.mrf.mxu0 }
 0x15f   : > { %v633_v46 = vadd.f32 %v2498_v20, %v632_v45 }
 0x161   : > { %v654_v47 = vmax.f32 %v633_v46, 0.0 }
 0x163   : > { %2356 = vmatmul.msk.f32.gmra.mxu3 %vm404_vm0, %v654_v47  ;;  %v2925_v47 = vpop.permute.xlu2 %915 }
 0x16b   : > { %2357 = vmatmul.msk.f32.gmra.mxu3 %vm404_vm0, %v655_v50 }
 0x173   : > { %2358 = vmatmul.msk.f32.gmra.mxu3 %vm404_vm0, %v656_v53 }
 0x17b   : > { %2359 = vmatmul.msk.f32.gmra.mxu3 %vm404_vm0, %v657_v56 }
 0x183   : > { %2360 = vmatmul.msk.f32.gmra.mxu3 %vm404_vm0, %v658_v59 }
 0x18b   : > { %2361 = vmatmul.msk.f32.gmra.mxu3 %vm404_vm0, %v659_v61 }
 0x193   : > { %2362 = vmatmul.msk.f32.gmra.mxu3 %vm404_vm0, %v660_v0 }
 0x1de   : > { %v710_v2 = vpop.f32.mrf.mxu3 }
 0x1df   : > { %v2863_v3 = vadd.f32 %v2499_v1, %v710_v2 }
 0x1e1   : > { %826 = vxpose.xlu0.b32.start [1/8] (short) (narrow) %v2863_v3, 8 }
 0x1e6   : > { %v713_v4 = vpop.f32.mrf.mxu3 }
 0x1e7   : > { %v2866_v5 = vadd.f32 %v2499_v1, %v713_v4 }
 0x1e9   : > { %827 = vxpose.xlu0.b32.cont [2/8] (short) (narrow) %v2866_v5, 8 }
 0x1ee   : > { %v716_v6 = vpop.f32.mrf.mxu3 }
 0x1ef   : > { %v2869_v7 = vadd.f32 %v2499_v1, %v716_v6 }
 0x1f1   : > { %828 = vxpose.xlu0.b32.cont [3/8] (short) (narrow) %v2869_v7, 8 }
 0x1f6   : > { %v719_v8 = vpop.f32.mrf.mxu3 }
 0x1f7   : > { %v2872_v9 = vadd.f32 %v2499_v1, %v719_v8 }
 0x1f9   : > { %829 = vxpose.xlu0.b32.cont [4/8] (short) (narrow) %v2872_v9, 8 }
 0x1fe   : > { %v722_v10 = vpop.f32.mrf.mxu3 }
 0x1ff   : > { %v2875_v11 = vadd.f32 %v2499_v1, %v722_v10 }
 0x201   : > { %830 = vxpose.xlu0.b32.cont [5/8] (short) (narrow) %v2875_v11, 8 }
 0x206   : > { %v725_v12 = vpop.f32.mrf.mxu3 }
 0x207   : > { %v2878_v13 = vadd.f32 %v2499_v1, %v725_v12 }
 0x209   : > { %831 = vxpose.xlu0.b32.cont [6/8] (short) (narrow) %v2878_v13, 8 }
 0x20e   : > { %v728_v15 = vpop.f32.mrf.mxu3 }
 0x20f   : > { %v2881_v17 = vadd.f32 %v2499_v1, %v728_v15  ;;  %v2599_v15 = vmov 3  }
 0x211   : > { %832 = vxpose.xlu0.b32.cont [7/8] (short) (narrow) %v2881_v17, 8 }
 0x216   : > { %v731_v19 = vpop.f32.mrf.mxu3 }
 0x217   : > { %v2884_v21 = vadd.f32 %v2499_v1, %v731_v19 }
 0x219   : > { %869 = vmatpush.msrb.mxu2 %v2884_v21  ;;  %833 = vxpose.xlu0.b32.end [8/8] (short) (narrow) %v2884_v21, 8 }
 0x21b   : > { %870 = vmatpush.msrb.mxu2 %v2881_v17 }
 0x21d   : > { %871 = vmatpush.msrb.mxu2 %v2878_v13 }
 0x21f   : > { %872 = vmatpush.msrb.mxu2 %v2875_v11 }
 0x221   : > { %873 = vmatpush.msrb.mxu2 %v2872_v9 }
 0x223   : > { %874 = vmatpush.msrb.mxu2 %v2869_v7 }
 0x225   : > { %875 = vmatpush.msrb.mxu2 %v2866_v5 }
 0x227   : > { %876 = vmatpush.msrb.mxu2 %v2863_v3 }
 0x285   : > { %v2895_v23 = vpop.trf.xlu0 }
 0x286   : > { %2379 = vmatmul.msk.f32.vlgmr.msrb.gmra.mxu2 %vm482_vm1, %v2895_v23 }
 0x309   : > { %v878_v38 = vpop.f32.mrf.mxu2 }
 0x30a   : > { %885 = vrot.lane.b32.xlu1 %v878_v38, %s2596_s14  ;;  %v882_v40 = vmul.f32 0.5, %v878_v38 }
 0x30c   : > { %v883_v41 = vadd.f32 %v882_v40, %v2916_v39 }
 0x37c   : > { %v886_v42 = vpop.permute.xlu1 %885 }
 0x37d   : > { %v889_v43 = vsel %vm888_vm3, %v883_v41, %v886_v42 }
 0x37e   : > { %2500 = vrcp.f32 %v889_v43  ;;  %v911_v32 = vmul.f32 %v2909_v35, %v889_v43  ;;  %v901_v18 = vand.u32 2147483648, %v889_v43  ;;  %v899_v22 = vand.u32 2147483647, %v889_v43 }
 0x37f   : > { %vm895_vm5 = vweird.f32 %v889_v43  ;;  %v918_v53 = vmul.f32 %v2925_v47, %v889_v43 }
 0x380   : > { %v912_v44 = vsub.f32 %v2906_v31, %v911_v32  ;;  %v902_v37 = vor.u32 1.1754944e-38, %v901_v18  ;;  %vm900_vm7 = vcmp.eq.f32.partialorder %v899_v22, 8.507059e+37 }
 0x382   : > { %921 = vperm.xlu2 %2468, %v912_v44  }
 0x384   : > { %v2501_v33 = vpop.eup %2500 }
 0x385   : > { %v891_v14 = vmul.f32 %v2501_v33, %v889_v43  ;;  %vm896_vm4 = vweird.f32 %v2501_v33 }
 0x386   : > { %vm897_vm6 = vmor %vm895_vm5, %vm896_vm4 }
 0x387   : > { %v892_v16 = vsub.f32 1.0, %v891_v14 }
 0x389   : > { %v893_v20 = vmul.f32 %v2501_v33, %v892_v16 }
 0x38a   : > { %2469 = vset.pattern.permute.xlu2 %v2597_v24 }
 0x38b   : > { %v894_v34 = vadd.f32 %v2501_v33, %v893_v20  ;;  %950 = vperm.xlu2 %2469, %v2909_v35  }
 0x38d   : > { %v898_v45 = vsel %vm897_vm6, %v2501_v33, %v894_v34 }
 0x38e   : > { %v903_v46 = vsel %vm900_vm7, %v902_v37, %v898_v45 }
 0x38f   : > { %906 = vperm.xlu1 %2467, %v903_v46  }
 0x393   : > { %2472 = vset.pattern.permute.xlu2 %v2598_v51 }
 0x397   : > { %2470 = vset.pattern.permute.xlu1 %v2597_v24 }
 0x3dc   : > { %v922_v52 = vpop.permute.xlu2 %921 }
 0x3e5   : > { %v2933_v10 = vpop.permute.xlu2 %950 }
 0x401   : > { %v907_v48 = vpop.permute.xlu1 %906 }
 0x402   : > { %v909_v49 = vmul.f32 %v907_v48, %v889_v43 }
 0x404   : > { %v924_v50 = vperm.slane %v909_v49, 0  ;;  %v2600_v49 = vmov 4  }
 0x406   : > { %v925_v54 = vmul.f32 %v924_v50, %v922_v52 }
 0x408   : > { %v926_v55 = vadd.f32 %v925_v54, %v918_v53 }
 0x40a   : > { %2502 = vrcp.f32 %v926_v55  ;;  %v938_v59 = vand.u32 2147483648, %v926_v55  ;;  %v936_v61 = vand.u32 2147483647, %v926_v55  ;;  %vm932_vm9 = vweird.f32 %v926_v55 }
 0x40b   : > { %v947_v2 = vmul.f32 %v926_v55, %v2909_v35  ;;  %v953_v25 = vmul.f32 %v2933_v10, %v926_v55 }
 0x40c   : > { %v939_v63 = vor.u32 1.1754944e-38, %v938_v59  ;;  %vm937_vm11 = vcmp.eq.f32.partialorder %v936_v61, 8.507059e+37 }
 0x40d   : > { %v948_v4 = vsub.f32 %v2906_v31, %v947_v2 }
 0x410   : > { %v2503_v56 = vpop.eup %2502 }
 0x411   : > { %v928_v57 = vmul.f32 %v2503_v56, %v926_v55  ;;  %vm933_vm8 = vweird.f32 %v2503_v56 }
 0x412   : > { %vm934_vm10 = vmor %vm932_vm9, %vm933_vm8 }
 0x413   : > { %v929_v58 = vsub.f32 1.0, %v928_v57 }
 0x415   : > { %v930_v60 = vmul.f32 %v2503_v56, %v929_v58 }
 0x417   : > { %v931_v62 = vadd.f32 %v2503_v56, %v930_v60 }
 0x419   : > { %v935_v0 = vsel %vm934_vm10, %v2503_v56, %v931_v62 }
 0x41a   : > { %v940_v1 = vsel %vm937_vm11, %v939_v63, %v935_v0 }
 0x41b   : > { %943 = vperm.xlu1 %2470, %v940_v1  }
 0x423   : > { %956 = vperm.xlu1 %2470, %v948_v4   ;;  %v2601_v4 = vmov 5  }
 0x424   : > { %2477 = vset.pattern.permute.xlu0 %v2601_v4 }
 0x42b   : > { %2471 = vset.pattern.permute.xlu1 %v2598_v51 }
 0x42c   : > { %985 = vperm.xlu1 %2471, %v2909_v35  }
 0x434   : > { %2474 = vset.pattern.permute.xlu1 %v2599_v15 }
 0x48d   : > { %v944_v6 = vpop.permute.xlu1 %943 }
 0x48e   : > { %v946_v8 = vmul.f32 %v944_v6, %v926_v55 }
 0x490   : > { %v959_v12 = vperm.slane %v946_v8, 1 }
 0x495   : > { %v957_v19 = vpop.permute.xlu1 %956 }
 0x496   : > { %v960_v38 = vmul.f32 %v959_v12, %v957_v19 }
 0x498   : > { %v961_v40 = vadd.f32 %v960_v38, %v953_v25 }
 0x49a   : > { %2504 = vrcp.f32 %v961_v40  ;;  %v973_v32 = vand.u32 2147483648, %v961_v40  ;;  %v971_v33 = vand.u32 2147483647, %v961_v40  ;;  %vm967_vm13 = vweird.f32 %v961_v40 }
 0x49b   : > { %v982_v22 = vmul.f32 %v961_v40, %v2909_v35 }
 0x49c   : > { %v974_v16 = vor.u32 1.1754944e-38, %v973_v32  ;;  %vm972_vm15 = vcmp.eq.f32.partialorder %v971_v33, 8.507059e+37 }
 0x49d   : > { %v983_v34 = vsub.f32 %v2906_v31, %v982_v22 }
 0x49e   : > { %v2941_v46 = vpop.permute.xlu1 %985 }
 0x49f   : > { %v988_v52 = vmul.f32 %v2941_v46, %v961_v40 }
 0x4a0   : > { %v2505_v41 = vpop.eup %2504 }
 0x4a1   : > { %v963_v42 = vmul.f32 %v2505_v41, %v961_v40  ;;  %vm968_vm12 = vweird.f32 %v2505_v41 }
 0x4a2   : > { %vm969_vm14 = vmor %vm967_vm13, %vm968_vm12 }
 0x4a3   : > { %v964_v43 = vsub.f32 1.0, %v963_v42 }
 0x4a5   : > { %v965_v44 = vmul.f32 %v2505_v41, %v964_v43 }
 0x4a7   : > { %v966_v14 = vadd.f32 %v2505_v41, %v965_v44 }
 0x4a9   : > { %v970_v18 = vsel %vm969_vm14, %v2505_v41, %v966_v14 }
 0x4aa   : > { %v975_v20 = vsel %vm972_vm15, %v974_v16, %v970_v18 }
 0x4ab   : > { %978 = vperm.xlu2 %2472, %v975_v20  }
 0x4b3   : > { %991 = vperm.xlu2 %2472, %v983_v34  }
 0x4bb   : > { %2473 = vset.pattern.permute.xlu2 %v2599_v15 }
 0x4bc   : > { %1020 = vperm.xlu2 %2473, %v2909_v35  }
 0x4c4   : > { %2476 = vset.pattern.permute.xlu2 %v2600_v49 }
 0x505   : > { %v979_v37 = vpop.permute.xlu2 %978 }
 0x506   : > { %v981_v45 = vmul.f32 %v979_v37, %v961_v40 }
 0x508   : > { %v994_v48 = vperm.slane %v981_v45, 2  ;;  %v2602_v45 = vmov 6  }
 0x50d   : > { %v992_v50 = vpop.permute.xlu2 %991 }
 0x50e   : > { %v995_v53 = vmul.f32 %v994_v48, %v992_v50 }
 0x510   : > { %v996_v54 = vadd.f32 %v995_v53, %v988_v52 }
 0x512   : > { %2506 = vrcp.f32 %v996_v54  ;;  %v1008_v58 = vand.u32 2147483648, %v996_v54  ;;  %v1006_v60 = vand.u32 2147483647, %v996_v54  ;;  %vm1002_vm2 = vweird.f32 %v996_v54 }
 0x513   : > { %v1017_v1 = vmul.f32 %v996_v54, %v2909_v35 }
 0x514   : > { %v1009_v62 = vor.u32 1.1754944e-38, %v1008_v58  ;;  %vm1007_vm5 = vcmp.eq.f32.partialorder %v1006_v60, 8.507059e+37 }
 0x515   : > { %v1018_v2 = vsub.f32 %v2906_v31, %v1017_v1 }
 0x516   : > { %v2952_v12 = vpop.permute.xlu2 %1020 }
 0x517   : > { %v1023_v38 = vmul.f32 %v2952_v12, %v996_v54 }
 0x518   : > { %v2507_v55 = vpop.eup %2506 }
 0x519   : > { %v998_v56 = vmul.f32 %v2507_v55, %v996_v54  ;;  %vm1003_vm0 = vweird.f32 %v2507_v55 }
 0x51a   : > { %vm1004_vm4 = vmor %vm1002_vm2, %vm1003_vm0 }
 0x51b   : > { %v999_v57 = vsub.f32 1.0, %v998_v56 }
 0x51d   : > { %v1000_v59 = vmul.f32 %v2507_v55, %v999_v57 }
 0x51f   : > { %v1001_v61 = vadd.f32 %v2507_v55, %v1000_v59 }
 0x521   : > { %v1005_v63 = vsel %vm1004_vm4, %v2507_v55, %v1001_v61 }
 0x522   : > { %v1010_v0 = vsel %vm1007_vm5, %v1009_v62, %v1005_v63 }
 0x523   : > { %1013 = vperm.xlu1 %2474, %v1010_v0  }
 0x52b   : > { %1026 = vperm.xlu1 %2474, %v1018_v2  }
 0x533   : > { %2475 = vset.pattern.permute.xlu1 %v2600_v49 }
 0x534   : > { %1055 = vperm.xlu1 %2475, %v2909_v35  }
 0x53c   : > { %2478 = vset.pattern.permute.xlu1 %v2601_v4 }
 0x53d   : > { %1090 = vperm.xlu1 %2478, %v2909_v35  }
 0x545   : > { %2481 = vset.pattern.permute.xlu1 %v2602_v45 }
 0x595   : > { %v1014_v6 = vpop.permute.xlu1 %1013 }
 0x596   : > { %v1016_v8 = vmul.f32 %v1014_v6, %v996_v54 }
 0x598   : > { %v1029_v19 = vperm.slane %v1016_v8, 3 }
 0x59d   : > { %v1027_v25 = vpop.permute.xlu1 %1026 }
 0x59e   : > { %v1030_v40 = vmul.f32 %v1029_v19, %v1027_v25 }
 0x5a0   : > { %v1031_v41 = vadd.f32 %v1030_v40, %v1023_v38 }
 0x5a2   : > { %2508 = vrcp.f32 %v1031_v41  ;;  %v1043_v44 = vand.u32 2147483648, %v1031_v41  ;;  %v1041_v14 = vand.u32 2147483647, %v1031_v41  ;;  %vm1037_vm7 = vweird.f32 %v1031_v41 }
 0x5a3   : > { %v1052_v34 = vmul.f32 %v1031_v41, %v2909_v35 }
 0x5a4   : > { %v1044_v18 = vor.u32 1.1754944e-38, %v1043_v44  ;;  %vm1042_vm9 = vcmp.eq.f32.partialorder %v1041_v14, 8.507059e+37 }
 0x5a5   : > { %v1053_v37 = vsub.f32 %v2906_v31, %v1052_v34 }
 0x5a6   : > { %v2959_v52 = vpop.permute.xlu1 %1055 }
 0x5a7   : > { %v1058_v55 = vmul.f32 %v2959_v52, %v1031_v41 }
 0x5a8   : > { %v2509_v42 = vpop.eup %2508 }
 0x5a9   : > { %v1033_v43 = vmul.f32 %v2509_v42, %v1031_v41  ;;  %vm1038_vm6 = vweird.f32 %v2509_v42 }
 0x5aa   : > { %vm1039_vm8 = vmor %vm1037_vm7, %vm1038_vm6 }
 0x5ab   : > { %v1034_v32 = vsub.f32 1.0, %v1033_v43 }
 0x5ad   : > { %v1035_v33 = vmul.f32 %v2509_v42, %v1034_v32 }
 0x5af   : > { %v1036_v16 = vadd.f32 %v2509_v42, %v1035_v33  ;;  %v2967_v40 = vpop.permute.xlu1 %1090 }
 0x5b1   : > { %v1040_v20 = vsel %vm1039_vm8, %v2509_v42, %v1036_v16  ;;  %v2603_v42 = vmov 7  }
 0x5b2   : > { %v1045_v22 = vsel %vm1042_vm9, %v1044_v18, %v1040_v20 }
 0x5b3   : > { %1048 = vperm.xlu2 %2476, %v1045_v22  }
 0x5bb   : > { %1061 = vperm.xlu2 %2476, %v1053_v37  }
 0x5c3   : > { %2479 = vset.pattern.permute.xlu2 %v2601_v4 }
 0x60d   : > { %v1049_v48 = vpop.permute.xlu2 %1048 }
 0x60e   : > { %v1051_v50 = vmul.f32 %v1049_v48, %v1031_v41 }
 0x610   : > { %v1064_v53 = vperm.slane %v1051_v50, 4 }
 0x615   : > { %v1062_v54 = vpop.permute.xlu2 %1061 }
 0x616   : > { %v1065_v56 = vmul.f32 %v1064_v53, %v1062_v54 }
 0x618   : > { %v1066_v57 = vadd.f32 %v1065_v56, %v1058_v55 }
 0x61a   : > { %2510 = vrcp.f32 %v1066_v57  ;;  %v1087_v58 = vmul.f32 %v1066_v57, %v2909_v35  ;;  %v1078_v63 = vand.u32 2147483648, %v1066_v57  ;;  %v1076_v1 = vand.u32 2147483647, %v1066_v57 }
 0x61b   : > { %vm1072_vm11 = vweird.f32 %v1066_v57  ;;  %v1093_v32 = vmul.f32 %v2967_v40, %v1066_v57 }
 0x61c   : > { %v1088_v59 = vsub.f32 %v2906_v31, %v1087_v58  ;;  %v1079_v6 = vor.u32 1.1754944e-38, %v1078_v63  ;;  %vm1077_vm13 = vcmp.eq.f32.partialorder %v1076_v1, 8.507059e+37 }
 0x61e   : > { %1096 = vperm.xlu2 %2479, %v1088_v59  }
 0x620   : > { %v2511_v60 = vpop.eup %2510 }
 0x621   : > { %v1068_v61 = vmul.f32 %v2511_v60, %v1066_v57  ;;  %vm1073_vm10 = vweird.f32 %v2511_v60 }
 0x622   : > { %vm1074_vm12 = vmor %vm1072_vm11, %vm1073_vm10 }
 0x623   : > { %v1069_v62 = vsub.f32 1.0, %v1068_v61 }
 0x625   : > { %v1070_v0 = vmul.f32 %v2511_v60, %v1069_v62 }
 0x626   : > { %2480 = vset.pattern.permute.xlu2 %v2602_v45 }
 0x627   : > { %v1071_v2 = vadd.f32 %v2511_v60, %v1070_v0  ;;  %1125 = vperm.xlu2 %2480, %v2909_v35  }
 0x629   : > { %v1075_v8 = vsel %vm1074_vm12, %v2511_v60, %v1071_v2 }
 0x62a   : > { %v1080_v19 = vsel %vm1077_vm13, %v1079_v6, %v1075_v8 }
 0x62b   : > { %1083 = vperm.xlu0 %2477, %v1080_v19  }
 0x62f   : > { %2483 = vset.pattern.permute.xlu2 %v2603_v42 }
 0x633   : > { %2488 = vset.pattern.permute.xlu0 %v2600_v49 }
 0x678   : > { %v1097_v43 = vpop.permute.xlu2 %1096 }
 0x681   : > { %v2976_v58 = vpop.permute.xlu2 %1125 }
 0x69d   : > { %v1084_v25 = vpop.permute.xlu0 %1083 }
 0x69e   : > { %v1086_v38 = vmul.f32 %v1084_v25, %v1066_v57 }
 0x6a0   : > { %v1099_v41 = vperm.slane %v1086_v38, 5 }
 0x6a2   : > { %v1100_v44 = vmul.f32 %v1099_v41, %v1097_v43 }
 0x6a4   : > { %v1101_v33 = vadd.f32 %v1100_v44, %v1093_v32 }
 0x6a6   : > { %2512 = vrcp.f32 %v1101_v33  ;;  %v1113_v20 = vand.u32 2147483648, %v1101_v33  ;;  %v1111_v34 = vand.u32 2147483647, %v1101_v33  ;;  %vm1107_vm15 = vweird.f32 %v1101_v33 }
 0x6a7   : > { %v1122_v54 = vmul.f32 %v1101_v33, %v2909_v35  ;;  %v1128_v61 = vmul.f32 %v2976_v58, %v1101_v33 }
 0x6a8   : > { %v1114_v48 = vor.u32 1.1754944e-38, %v1113_v20  ;;  %vm1112_vm2 = vcmp.eq.f32.partialorder %v1111_v34, 8.507059e+37 }
 0x6a9   : > { %v1123_v55 = vsub.f32 %v2906_v31, %v1122_v54 }
 0x6ac   : > { %v2513_v14 = vpop.eup %2512 }
 0x6ad   : > { %v1103_v16 = vmul.f32 %v2513_v14, %v1101_v33  ;;  %vm1108_vm14 = vweird.f32 %v2513_v14 }
 0x6ae   : > { %vm1109_vm0 = vmor %vm1107_vm15, %vm1108_vm14 }
 0x6af   : > { %v1104_v18 = vsub.f32 1.0, %v1103_v16 }
 0x6b1   : > { %v1105_v22 = vmul.f32 %v2513_v14, %v1104_v18 }
 0x6b3   : > { %v1106_v37 = vadd.f32 %v2513_v14, %v1105_v22 }
 0x6b5   : > { %v1110_v50 = vsel %vm1109_vm0, %v2513_v14, %v1106_v37 }
 0x6b6   : > { %v1115_v53 = vsel %vm1112_vm2, %v1114_v48, %v1110_v50 }
 0x6b7   : > { %1118 = vperm.xlu1 %2481, %v1115_v53  }
 0x6bf   : > { %1131 = vperm.xlu1 %2481, %v1123_v55  }
 0x6c7   : > { %2482 = vset.pattern.permute.xlu1 %v2603_v42 }
 0x6c8   : > { %1160 = vperm.xlu1 %2482, %v2909_v35  }
 0x6d0   : > { %2484 = vset.pattern.permute.xlu1 %v2595_v36 }
 0x729   : > { %v1119_v56 = vpop.permute.xlu1 %1118 }
 0x72a   : > { %v1121_v57 = vmul.f32 %v1119_v56, %v1101_v33 }
 0x72c   : > { %v1134_v59 = vperm.slane %v1121_v57, 6 }
 0x731   : > { %v1132_v60 = vpop.permute.xlu1 %1131 }
 0x732   : > { %v1135_v62 = vmul.f32 %v1134_v59, %v1132_v60 }
 0x734   : > { %v1136_v63 = vadd.f32 %v1135_v62, %v1128_v61 }
 0x736   : > { %2514 = vrcp.f32 %v1136_v63  ;;  %v1148_v6 = vand.u32 2147483648, %v1136_v63  ;;  %v1146_v19 = vand.u32 2147483647, %v1136_v63  ;;  %vm1142_vm5 = vweird.f32 %v1136_v63 }
 0x737   : > { %v1157_v43 = vmul.f32 %v1136_v63, %v2909_v35 }
 0x738   : > { %v1149_v36 = vor.u32 1.1754944e-38, %v1148_v6  ;;  %vm1147_vm7 = vcmp.eq.f32.partialorder %v1146_v19, 8.507059e+37  ;;  %v769_v6 = vadd.f32 %v2906_v31, %v2765_v26  ;;  %v794_v19 = vpop.f32.mrf.mxu0  ;;  %v741_v26 = vadd.s32 8, %v2899_v28 }
 0x739   : > { %v1158_v32 = vsub.f32 %v2906_v31, %v1157_v43 }
 0x73a   : > { %v2981_v14 = vpop.permute.xlu1 %1160  ;;  %vm748_vm8 = vcmp.eq.s32.totalorder %v741_v26, %v2901_v29 }
 0x73b   : > { %v1163_v20 = vmul.f32 %v2981_v14, %v1136_v63 }
 0x73c   : > { %v2515_v0 = vpop.eup %2514 }
 0x73d   : > { %v1138_v1 = vmul.f32 %v2515_v0, %v1136_v63  ;;  %vm1143_vm4 = vweird.f32 %v2515_v0 }
 0x73e   : > { %vm1144_vm6 = vmor %vm1142_vm5, %vm1143_vm4 }
 0x73f   : > { %v1139_v2 = vsub.f32 1.0, %v1138_v1 }
 0x740   : > { %v797_v43 = vpop.f32.mrf.mxu0 }
 0x741   : > { %v1140_v8 = vmul.f32 %v2515_v0, %v1139_v2 }
 0x743   : > { %v1141_v25 = vadd.f32 %v2515_v0, %v1140_v8 }
 0x745   : > { %v1145_v38 = vsel %vm1144_vm6, %v2515_v0, %v1141_v25 }
 0x746   : > { %v1150_v41 = vsel %vm1147_vm7, %v1149_v36, %v1145_v38  ;;  %v3004_v36 = vadd.f32 %v794_v19, %v769_v6  ;;  %v2583_v6 = vld [vmem:[%s2715_s24 + $0x28] sm:$0xff]  ;;  %v3053_v19 = vmul.f32 0.5, %v2866_v5 }
 0x747   : > { %1153 = vperm.xlu2 %2483, %v1150_v41   ;;  %v2364_v41 = vsel %vm748_vm8, 1.0, %v2594_v30 }
 0x74f   : > { %1166 = vperm.xlu2 %2483, %v1158_v32   ;;  %v770_v32 = vadd.f32 %v2364_v41, %v2770_v27  ;;  %v743_v27 = vadd.s32 24, %v2899_v28 }
 0x751   : > { %vm750_vm10 = vcmp.eq.s32.totalorder %v743_v27, %v2901_v29  ;;  %v2585_v27 = vld [vmem:[%s2715_s24 + $0x38] sm:$0xff] }
 0x7a1   : > { %v1154_v44 = vpop.permute.xlu2 %1153 }
 0x7a2   : > { %v1156_v33 = vmul.f32 %v1154_v44, %v1136_v63  ;;  %v3014_v44 = vadd.f32 %v797_v43, %v770_v32  ;;  %v2584_v43 = vld [vmem:[%s2715_s24 + $0x30] sm:$0xff] }
 0x7a4   : > { %v1169_v16 = vperm.slane %v1156_v33, 7 }
 0x7a9   : > { %v1167_v18 = vpop.permute.xlu2 %1166 }
 0x7aa   : > { %v1170_v22 = vmul.f32 %v1169_v16, %v1167_v18  ;;  %v800_v16 = vpop.f32.mrf.mxu0  ;;  %v2580_v18 = vld [vmem:[%s2715_s24 + $0x10] sm:$0xff] }
 0x7ac   : > { %v1171_v34 = vadd.f32 %v1170_v22, %v1163_v20 }
 0x7ae   : > { %v1172_v37 = vmul.f32 0.5, %v1171_v34  ;;  %v2366_v34 = vsel %vm750_vm10, 1.0, %v2594_v30 }
 0x7b0   : > { %1174 = vrot.lane.b32.xlu1 %v1172_v37, %s2604_s17 }
 0x7b2   : > { %v803_v37 = vpop.f32.mrf.mxu0 }
 0x822   : > { %v1175_v48 = vpop.permute.xlu1 %1174 }
 0x823   : > { %v1177_v50 = vsub.f32 %v2906_v31, %v1175_v48  ;;  %v2581_v48 = vld [vmem:[%s2715_s24 + $0x18] sm:$0xff] }
 0x825   : > { %1217 = vmatpush.msrb.mxu3 %v1177_v50  ;;  %v772_v50 = vadd.f32 %v2581_v48, %v2366_v34 }
 0x826   : > { %2380 = vmatmul.msk.f32.vlgmr.msrb.gmra.mxu3 %vm888_vm3, %v2863_v3 }
 0x82e   : > { %2381 = vmatmul.msk.f32.gmra.mxu3 %vm888_vm3, %v2866_v5 }
 0x836   : > { %2382 = vmatmul.msk.f32.gmra.mxu3 %vm888_vm3, %v2869_v7 }
 0x83e   : > { %2383 = vmatmul.msk.f32.gmra.mxu3 %vm888_vm3, %v2872_v9 }
 0x846   : > { %2384 = vmatmul.msk.f32.gmra.mxu3 %vm888_vm3, %v2875_v11 }
 0x84e   : > { %2385 = vmatmul.msk.f32.gmra.mxu3 %vm888_vm3, %v2878_v13 }
 0x856   : > { %2386 = vmatmul.msk.f32.gmra.mxu3 %vm888_vm3, %v2881_v17 }
 0x85e   : > { %2387 = vmatmul.msk.f32.gmra.mxu3 %vm888_vm3, %v2884_v21 }
 0x8a9   : > { %v1219_v53 = vpop.f32.mrf.mxu3 }
 0x8aa   : > { %v1243_v38 = vmul.f32 0.25, %v1219_v53  ;;  %v3030_v53 = vadd.f32 %v803_v37, %v772_v50  ;;  %v3081_v37 = vmul.f32 0.5, %v2872_v9 }
 0x8b1   : > { %v1222_v54 = vpop.f32.mrf.mxu3 }
 0x8b2   : > { %v1244_v25 = vmul.f32 0.25, %v1222_v54  ;;  %v744_v54 = vadd.s32 32, %v2899_v28 }
 0x8b4   : > { %vm751_vm11 = vcmp.eq.s32.totalorder %v744_v54, %v2901_v29 }
 0x8b9   : > { %v1225_v55 = vpop.f32.mrf.mxu3 }
 0x8ba   : > { %v1245_v8 = vmul.f32 0.25, %v1225_v55  ;;  %v2367_v55 = vsel %vm751_vm11, 1.0, %v2594_v30 }
 0x8c1   : > { %v1228_v56 = vpop.f32.mrf.mxu3 }
 0x8c2   : > { %v1246_v2 = vmul.f32 0.25, %v1228_v56  ;;  %v806_v56 = vpop.f32.mrf.mxu0 }
 0x8c9   : > { %v1231_v57 = vpop.f32.mrf.mxu3 }
 0x8ca   : > { %v1247_v1 = vmul.f32 0.25, %v1231_v57  ;;  %v2582_v57 = vld [vmem:[%s2715_s24 + $0x20] sm:$0xff] }
 0x8d1   : > { %v1234_v59 = vpop.f32.mrf.mxu3 }
 0x8d2   : > { %v1248_v0 = vmul.f32 0.25, %v1234_v59  ;;  %v773_v59 = vadd.f32 %v2582_v57, %v2367_v55 }
 0x8d9   : > { %v1237_v60 = vpop.f32.mrf.mxu3 }
 0x8da   : > { %v1249_v63 = vmul.f32 0.25, %v1237_v60  ;;  %v3039_v60 = vmul.f32 0.5, %v2863_v3 }
 0x8e1   : > { %v1240_v61 = vpop.f32.mrf.mxu3 }
 0x8e2   : > { %v1250_v62 = vmul.f32 0.25, %v1240_v61  ;;  %v3041_v61 = vadd.f32 %v806_v56, %v773_v59 }
 0x8e4   : > { %1259 = vmatpush.msrb.mxu1 %v1250_v62  ;;  %1303 = vmatpush.msra.mxu2 %v1250_v62  ;;  %v745_v62 = vadd.s32 40, %v2899_v28 }
 0x8e6   : > { %1260 = vmatpush.msrb.mxu1 %v1249_v63  ;;  %1304 = vmatpush.msra.mxu2 %v1249_v63  ;;  %vm752_vm12 = vcmp.eq.s32.totalorder %v745_v62, %v2901_v29 }
 0x8e8   : > { %1261 = vmatpush.msrb.mxu1 %v1248_v0  ;;  %1305 = vmatpush.msra.mxu2 %v1248_v0  ;;  %v1344_v0 = vsub.f32 %v2863_v3, %v3039_v60  ;;  %v746_v3 = vadd.s32 48, %v2899_v28 }
 0x8ea   : > { %1262 = vmatpush.msrb.mxu1 %v1247_v1  ;;  %1306 = vmatpush.msra.mxu2 %v1247_v1  ;;  %v2368_v1 = vsel %vm752_vm12, 1.0, %v2594_v30  ;;  %vm753_vm13 = vcmp.eq.s32.totalorder %v746_v3, %v2901_v29 }
 0x8eb   : > { %v2369_v26 = vsel %vm753_vm13, 1.0, %v2594_v30 }
 0x8ec   : > { %1263 = vmatpush.msrb.mxu1 %v1246_v2  ;;  %1307 = vmatpush.msra.mxu2 %v1246_v2  ;;  %v809_v2 = vpop.f32.mrf.mxu0  ;;  %v775_v32 = vadd.f32 %v2584_v43, %v2369_v26 }
 0x8ee   : > { %1264 = vmatpush.msrb.mxu1 %v1245_v8  ;;  %1308 = vmatpush.msra.mxu2 %v1245_v8  ;;  %v774_v8 = vadd.f32 %v2583_v6, %v2368_v1 }
 0x8f0   : > { %1265 = vmatpush.msrb.mxu1 %v1244_v25  ;;  %1309 = vmatpush.msra.mxu2 %v1244_v25  ;;  %v3055_v25 = vadd.f32 %v809_v2, %v774_v8 }
 0x8f2   : > { %1266 = vmatpush.msrb.mxu1 %v1243_v38  ;;  %1310 = vmatpush.msra.mxu2 %v1243_v38  ;;  %v1345_v38 = vsub.f32 %v2866_v5, %v3053_v19  ;;  %v747_v5 = vadd.s32 56, %v2899_v28 }
 0x8f3   : > { %2388 = vmatmul.msk.f32.vlgmr.msrb.gmra.mxu1 %vm482_vm1, %v2895_v23  ;;  %2389 = vmatmul.msk.f32.vlgmr.msra.gmra.mxu2 %vm482_vm1, %v3004_v36  ;;  %v742_v23 = vadd.s32 16, %v2899_v28  ;;  %v3091_v28 = vmul.f32 0.5, %v2875_v11 }
 0x8f4   : > { %v812_v41 = vpop.f32.mrf.mxu0  ;;  %vm754_vm14 = vcmp.eq.s32.totalorder %v747_v5, %v2901_v29 }
 0x8f5   : > { %vm749_vm9 = vcmp.eq.s32.totalorder %v742_v23, %v2901_v29  ;;  %v3067_v23 = vmul.f32 0.5, %v2869_v7  ;;  %v1348_v29 = vsub.f32 %v2875_v11, %v3091_v28  ;;  %v3109_v11 = vmul.f32 0.5, %v2884_v21 }
 0x8f6   : > { %v2365_v33 = vsel %vm749_vm9, 1.0, %v2594_v30 }
 0x8f7   : > { %v771_v20 = vadd.f32 %v2580_v18, %v2365_v33  ;;  %v3069_v33 = vadd.f32 %v812_v41, %v775_v32  ;;  %v2370_v18 = vsel %vm754_vm14, 1.0, %v2594_v30  ;;  %v3097_v30 = vmul.f32 0.5, %v2878_v13 }
 0x8f8   : > { %v776_v34 = vadd.f32 %v2585_v27, %v2370_v18  ;;  %v1351_v55 = vsub.f32 %v2884_v21, %v3109_v11 }
 0x8f9   : > { %v3022_v22 = vadd.f32 %v800_v16, %v771_v20  ;;  %v1346_v16 = vsub.f32 %v2869_v7, %v3067_v23  ;;  %v1347_v7 = vsub.f32 %v2872_v9, %v3081_v37  ;;  %v1349_v50 = vsub.f32 %v2878_v13, %v3097_v30 }
 0x8fa   : > { %v3103_v9 = vmul.f32 0.5, %v2881_v17 }
 0x8fb   : > { %2390 = vmatmul.msk.f32.gmra.mxu2 %vm482_vm1, %v3014_v44 }
 0x8fc   : > { %v815_v20 = vpop.f32.mrf.mxu0  ;;  %v1350_v54 = vsub.f32 %v2881_v17, %v3103_v9 }
 0x8fd   : > { %v3083_v48 = vadd.f32 %v815_v20, %v776_v34 }
 0x903   : > { %2391 = vmatmul.msk.f32.gmra.mxu2 %vm482_vm1, %v3022_v22 }
 0x90b   : > { %2392 = vmatmul.msk.f32.gmra.mxu2 %vm482_vm1, %v3030_v53 }
 0x913   : > { %2393 = vmatmul.msk.f32.gmra.mxu2 %vm482_vm1, %v3041_v61 }
 0x91b   : > { %2394 = vmatmul.msk.f32.gmra.mxu2 %vm482_vm1, %v3055_v25 }
 0x923   : > { %2395 = vmatmul.msk.f32.gmra.mxu2 %vm482_vm1, %v3069_v33 }
 0x92b   : > { %2396 = vmatmul.msk.f32.gmra.mxu2 %vm482_vm1, %v3083_v48 }
 0x970   : > { %v1268_v63 = vpop.f32.mrf.mxu1 }
 0x971   : > { %1391 = vmatpush.msra.mxu1 %v1268_v63 }
 0x972   : > { %2397 = vmatmul.msk.f32.vlgmr.msra.gmra.mxu1 %vm888_vm3, %v1344_v0 }
 0x976   : > { %v1312_v56 = vpop.f32.mrf.mxu2 }
 0x97a   : > { %2398 = vmatmul.msk.f32.gmra.mxu1 %vm888_vm3, %v1345_v38 }
 0x97e   : > { %v1315_v13 = vpop.f32.mrf.mxu2 }
 0x982   : > { %2399 = vmatmul.msk.f32.gmra.mxu1 %vm888_vm3, %v1346_v16 }
 0x986   : > { %v1318_v0 = vpop.f32.mrf.mxu2 }
 0x98a   : > { %2400 = vmatmul.msk.f32.gmra.mxu1 %vm888_vm3, %v1347_v7 }
 0x98e   : > { %v1321_v8 = vpop.f32.mrf.mxu2 }
 0x992   : > { %2401 = vmatmul.msk.f32.gmra.mxu1 %vm888_vm3, %v1348_v29 }
 0x996   : > { %v1324_v32 = vpop.f32.mrf.mxu2 }
 0x99a   : > { %2402 = vmatmul.msk.f32.gmra.mxu1 %vm888_vm3, %v1349_v50 }
 0x99e   : > { %v1327_v34 = vpop.f32.mrf.mxu2 }
 0x9a2   : > { %2403 = vmatmul.msk.f32.gmra.mxu1 %vm888_vm3, %v1350_v54 }
 0x9aa   : > { %2404 = vmatmul.msk.f32.gmra.mxu1 %vm888_vm3, %v1351_v55 }
 0x9ef   : > { %v1393_v57 = vpop.f32.mrf.mxu1 }
 0x9f0   : > { %v1417_v59 = vmul.f32 0.5, %v1393_v57 }
 0x9f2   : > { %v1425_v62 = vadd.f32 %v1417_v59, %v1312_v56  ;;  %v1330_v56 = vpop.f32.mrf.mxu2 }
 0x9f4   : > { %v3115_v63 = vadd.f32 %v1425_v62, %v3039_v60 }
 0x9f6   : > { %1441 = vxpose.xlu2.b32.start [1/8] (short) (narrow) %v3115_v63, 8 }
 0x9f7   : > { %v1396_v17 = vpop.f32.mrf.mxu1 }
 0x9f8   : > { %v1418_v1 = vmul.f32 0.5, %v1396_v17 }
 0x9fa   : > { %v1426_v2 = vadd.f32 %v1418_v1, %v1315_v13  ;;  %v1333_v17 = vpop.f32.mrf.mxu2 }
 0x9fc   : > { %v3119_v6 = vadd.f32 %v1426_v2, %v3053_v19 }
 0x9fe   : > { %1442 = vxpose.xlu2.b32.cont [2/8] (short) (narrow) %v3119_v6, 8 }
 0x9ff   : > { %v1399_v21 = vpop.f32.mrf.mxu1 }
 0xa00   : > { %v1419_v3 = vmul.f32 0.5, %v1399_v21 }
 0xa02   : > { %v1427_v38 = vadd.f32 %v1419_v3, %v1318_v0 }
 0xa04   : > { %v3123_v26 = vadd.f32 %v1427_v38, %v3067_v23 }
 0xa06   : > { %1443 = vxpose.xlu2.b32.cont [3/8] (short) (narrow) %v3123_v26, 8 }
 0xa07   : > { %v1402_v41 = vpop.f32.mrf.mxu1 }
 0xa08   : > { %v1420_v43 = vmul.f32 0.5, %v1402_v41 }
 0xa0a   : > { %v1428_v5 = vadd.f32 %v1420_v43, %v1321_v8 }
 0xa0c   : > { %v3127_v16 = vadd.f32 %v1428_v5, %v3081_v37 }
 0xa0e   : > { %1444 = vxpose.xlu2.b32.cont [4/8] (short) (narrow) %v3127_v16, 8 }
 0xa0f   : > { %v1405_v18 = vpop.f32.mrf.mxu1 }
 0xa10   : > { %v1421_v20 = vmul.f32 0.5, %v1405_v18 }
 0xa12   : > { %v1429_v27 = vadd.f32 %v1421_v20, %v1324_v32 }
 0xa14   : > { %v3131_v7 = vadd.f32 %v1429_v27, %v3091_v28 }
 0xa16   : > { %1445 = vxpose.xlu2.b32.cont [5/8] (short) (narrow) %v3131_v7, 8 }
 0xa17   : > { %v1408_v29 = vpop.f32.mrf.mxu1 }
 0xa18   : > { %v1422_v50 = vmul.f32 0.5, %v1408_v29 }
 0xa1a   : > { %v1430_v54 = vadd.f32 %v1422_v50, %v1327_v34 }
 0xa1c   : > { %v3135_v55 = vadd.f32 %v1430_v54, %v3097_v30 }
 0xa1e   : > { %1446 = vxpose.xlu2.b32.cont [6/8] (short) (narrow) %v3135_v55, 8 }
 0xa1f   : > { %v1411_v13 = vpop.f32.mrf.mxu1 }
 0xa20   : > { %v1423_v57 = vmul.f32 0.5, %v1411_v13 }
 0xa22   : > { %v1431_v59 = vadd.f32 %v1423_v57, %v1330_v56 }
 0xa24   : > { %v3139_v62 = vadd.f32 %v1431_v59, %v3103_v9 }
 0xa26   : > { %1447 = vxpose.xlu2.b32.cont [7/8] (short) (narrow) %v3139_v62, 8 }
 0xa27   : > { %v1414_v0 = vpop.f32.mrf.mxu1 }
 0xa28   : > { %v1424_v1 = vmul.f32 0.5, %v1414_v0 }
 0xa2a   : > { %v1432_v2 = vadd.f32 %v1424_v1, %v1333_v17 }
 0xa2c   : > { %v3143_v21 = vadd.f32 %v1432_v2, %v3109_v11 }
 0xa2e   : > { %1448 = vxpose.xlu2.b32.end [8/8] (short) (narrow) %v3143_v21, 8  ;;  %1484 = vmatpush.msra.mxu0 %v3143_v21 }
 0xa30   : > { %1485 = vmatpush.msra.mxu0 %v3139_v62 }
 0xa32   : > { %1486 = vmatpush.msra.mxu0 %v3135_v55 }
 0xa34   : > { %1487 = vmatpush.msra.mxu0 %v3131_v7 }
 0xa36   : > { %1488 = vmatpush.msra.mxu0 %v3127_v16 }
 0xa38   : > { %1489 = vmatpush.msra.mxu0 %v3123_v26 }
 0xa3a   : > { %1490 = vmatpush.msra.mxu0 %v3119_v6 }
 0xa3c   : > { %1491 = vmatpush.msra.mxu0 %v3115_v63 }
 0xa8f   : > { %v3154_v8 = vpop.trf.xlu2 }
 0xa90   : > { %2405 = vmatmul.msk.f32.vlgmr.msra.gmra.mxu0 %vm482_vm1, %v3154_v8  ;;  %2492 = vset.pattern.permute.xlu2 %v2602_v45 }
 0xb0d   : > { %v1493_v3 = vpop.f32.mrf.mxu0 }
 0xb0e   : > { %1499 = vrot.lane.b32.xlu1 %v1493_v3, %s2596_s14  ;;  %v1496_v38 = vmul.f32 0.5, %v1493_v3 }
 0xb10   : > { %v1497_v41 = vadd.f32 %v1496_v38, %v2916_v39 }
 0xb80   : > { %v1500_v43 = vpop.permute.xlu1 %1499 }
 0xb81   : > { %v1502_v32 = vsel %vm888_vm3, %v1497_v41, %v1500_v43 }
 0xb82   : > { %2516 = vrcp.f32 %v1502_v32  ;;  %v1514_v27 = vand.u32 2147483648, %v1502_v32  ;;  %v1512_v29 = vand.u32 2147483647, %v1502_v32  ;;  %vm1508_vm0 = vweird.f32 %v1502_v32 }
 0xb83   : > { %v1523_v39 = vmul.f32 %v1502_v32, %v2909_v35  ;;  %v1525_v2 = vmul.f32 %v1502_v32, %v2925_v47 }
 0xb84   : > { %v1515_v54 = vor.u32 1.1754944e-38, %v1514_v27  ;;  %vm1513_vm4 = vcmp.eq.f32.partialorder %v1512_v29, 8.507059e+37 }
 0xb85   : > { %v1524_v57 = vsub.f32 %v2906_v31, %v1523_v39 }
 0xb88   : > { %v2517_v5 = vpop.eup %2516 }
 0xb89   : > { %v1504_v18 = vmul.f32 %v2517_v5, %v1502_v32  ;;  %vm1509_vm15 = vweird.f32 %v2517_v5 }
 0xb8a   : > { %vm1510_vm2 = vmor %vm1508_vm0, %vm1509_vm15 }
 0xb8b   : > { %v1505_v20 = vsub.f32 1.0, %v1504_v18 }
 0xb8d   : > { %v1506_v34 = vmul.f32 %v2517_v5, %v1505_v20 }
 0xb8f   : > { %v1507_v50 = vadd.f32 %v2517_v5, %v1506_v34 }
 0xb91   : > { %v1511_v56 = vsel %vm1510_vm2, %v2517_v5, %v1507_v50 }
 0xb92   : > { %v1516_v13 = vsel %vm1513_vm4, %v1515_v54, %v1511_v56 }
 0xb93   : > { %1519 = vperm.xlu1 %2484, %v1516_v13  }
 0xb9b   : > { %1528 = vperm.xlu1 %2484, %v1524_v57  }
 0xba3   : > { %2485 = vset.pattern.permute.xlu1 %v2597_v24 }
 0xc05   : > { %v1520_v59 = vpop.permute.xlu1 %1519 }
 0xc06   : > { %v1522_v0 = vmul.f32 %v1520_v59, %v1502_v32 }
 0xc08   : > { %v1531_v17 = vperm.slane %v1522_v0, 0 }
 0xc0d   : > { %v1529_v1 = vpop.permute.xlu1 %1528 }
 0xc0e   : > { %v1532_v3 = vmul.f32 %v1531_v17, %v1529_v1 }
 0xc10   : > { %v1533_v38 = vadd.f32 %v1532_v3, %v1525_v2 }
 0xc12   : > { %2518 = vrcp.f32 %v1533_v38  ;;  %v1545_v18 = vand.u32 2147483648, %v1533_v38  ;;  %v1543_v27 = vand.u32 2147483647, %v1533_v38  ;;  %vm1539_vm6 = vweird.f32 %v1533_v38 }
 0xc13   : > { %v1554_v47 = vmul.f32 %v1533_v38, %v2909_v35  ;;  %v1556_v57 = vmul.f32 %v1533_v38, %v2933_v10 }
 0xc14   : > { %v1546_v24 = vor.u32 1.1754944e-38, %v1545_v18  ;;  %vm1544_vm8 = vcmp.eq.f32.partialorder %v1543_v27, 8.507059e+37 }
 0xc15   : > { %v1555_v32 = vsub.f32 %v2906_v31, %v1554_v47 }
 0xc18   : > { %v2519_v41 = vpop.eup %2518 }
 0xc19   : > { %v1535_v43 = vmul.f32 %v2519_v41, %v1533_v38  ;;  %vm1540_vm5 = vweird.f32 %v2519_v41 }
 0xc1a   : > { %vm1541_vm7 = vmor %vm1539_vm6, %vm1540_vm5 }
 0xc1b   : > { %v1536_v5 = vsub.f32 1.0, %v1535_v43 }
 0xc1d   : > { %v1537_v20 = vmul.f32 %v2519_v41, %v1536_v5 }
 0xc1f   : > { %v1538_v34 = vadd.f32 %v2519_v41, %v1537_v20 }
 0xc21   : > { %v1542_v29 = vsel %vm1541_vm7, %v2519_v41, %v1538_v34 }
 0xc22   : > { %v1547_v50 = vsel %vm1544_vm8, %v1546_v24, %v1542_v29 }
 0xc23   : > { %1550 = vperm.xlu1 %2485, %v1547_v50  }
 0xc2b   : > { %1559 = vperm.xlu1 %2485, %v1555_v32  }
 0xc33   : > { %2486 = vset.pattern.permute.xlu1 %v2598_v51 }
 0xc95   : > { %v1551_v54 = vpop.permute.xlu1 %1550 }
 0xc96   : > { %v1553_v56 = vmul.f32 %v1551_v54, %v1533_v38 }
 0xc98   : > { %v1562_v13 = vperm.slane %v1553_v56, 1 }
 0xc9d   : > { %v1560_v39 = vpop.permute.xlu1 %1559 }
 0xc9e   : > { %v1563_v59 = vmul.f32 %v1562_v13, %v1560_v39 }
 0xca0   : > { %v1564_v0 = vadd.f32 %v1563_v59, %v1556_v57 }
 0xca2   : > { %2520 = vrcp.f32 %v1564_v0  ;;  %v1576_v3 = vand.u32 2147483648, %v1564_v0  ;;  %v1574_v43 = vand.u32 2147483647, %v1564_v0  ;;  %vm1570_vm10 = vweird.f32 %v1564_v0 }
 0xca3   : > { %v1585_v10 = vmul.f32 %v1564_v0, %v2909_v35  ;;  %v1587_v50 = vmul.f32 %v1564_v0, %v2941_v46 }
 0xca4   : > { %v1577_v51 = vor.u32 1.1754944e-38, %v1576_v3  ;;  %vm1575_vm12 = vcmp.eq.f32.partialorder %v1574_v43, 8.507059e+37 }
 0xca5   : > { %v1586_v38 = vsub.f32 %v2906_v31, %v1585_v10 }
 0xca8   : > { %v2521_v17 = vpop.eup %2520 }
 0xca9   : > { %v1566_v1 = vmul.f32 %v2521_v17, %v1564_v0  ;;  %vm1571_vm9 = vweird.f32 %v2521_v17 }
 0xcaa   : > { %vm1572_vm11 = vmor %vm1570_vm10, %vm1571_vm9 }
 0xcab   : > { %v1567_v2 = vsub.f32 1.0, %v1566_v1 }
 0xcad   : > { %v1568_v41 = vmul.f32 %v2521_v17, %v1567_v2 }
 0xcaf   : > { %v1569_v5 = vadd.f32 %v2521_v17, %v1568_v41 }
 0xcb1   : > { %v1573_v18 = vsel %vm1572_vm11, %v2521_v17, %v1569_v5 }
 0xcb2   : > { %v1578_v20 = vsel %vm1575_vm12, %v1577_v51, %v1573_v18 }
 0xcb3   : > { %1581 = vperm.xlu1 %2486, %v1578_v20  }
 0xcbb   : > { %1590 = vperm.xlu1 %2486, %v1586_v38  }
 0xcc3   : > { %2487 = vset.pattern.permute.xlu1 %v2599_v15 }
 0xd25   : > { %v1582_v27 = vpop.permute.xlu1 %1581 }
 0xd26   : > { %v1584_v34 = vmul.f32 %v1582_v27, %v1564_v0 }
 0xd28   : > { %v1593_v24 = vperm.slane %v1584_v34, 2 }
 0xd2d   : > { %v1591_v29 = vpop.permute.xlu1 %1590 }
 0xd2e   : > { %v1594_v47 = vmul.f32 %v1593_v24, %v1591_v29 }
 0xd30   : > { %v1595_v32 = vadd.f32 %v1594_v47, %v1587_v50 }
 0xd32   : > { %2522 = vrcp.f32 %v1595_v32  ;;  %v1607_v39 = vand.u32 2147483648, %v1595_v32  ;;  %v1605_v59 = vand.u32 2147483647, %v1595_v32  ;;  %vm1601_vm14 = vweird.f32 %v1595_v32 }
 0xd33   : > { %v1616_v46 = vmul.f32 %v1595_v32, %v2909_v35  ;;  %v1618_v51 = vmul.f32 %v1595_v32, %v2952_v12 }
 0xd34   : > { %v1608_v15 = vor.u32 1.1754944e-38, %v1607_v39  ;;  %vm1606_vm0 = vcmp.eq.f32.partialorder %v1605_v59, 8.507059e+37 }
 0xd35   : > { %v1617_v0 = vsub.f32 %v2906_v31, %v1616_v46 }
 0xd38   : > { %v2523_v54 = vpop.eup %2522 }
 0xd39   : > { %v1597_v56 = vmul.f32 %v2523_v54, %v1595_v32  ;;  %vm1602_vm13 = vweird.f32 %v2523_v54 }
 0xd3a   : > { %vm1603_vm15 = vmor %vm1601_vm14, %vm1602_vm13 }
 0xd3b   : > { %v1598_v13 = vsub.f32 1.0, %v1597_v56 }
 0xd3d   : > { %v1599_v57 = vmul.f32 %v2523_v54, %v1598_v13 }
 0xd3f   : > { %v1600_v17 = vadd.f32 %v2523_v54, %v1599_v57 }
 0xd41   : > { %v1604_v1 = vsel %vm1603_vm15, %v2523_v54, %v1600_v17 }
 0xd42   : > { %v1609_v2 = vsel %vm1606_vm0, %v1608_v15, %v1604_v1 }
 0xd43   : > { %1612 = vperm.xlu1 %2487, %v1609_v2  }
 0xd4b   : > { %1621 = vperm.xlu1 %2487, %v1617_v0  }
 0xd53   : > { %2489 = vset.pattern.permute.xlu1 %v2600_v49 }
 0xdb5   : > { %v1613_v3 = vpop.permute.xlu1 %1612 }
 0xdb6   : > { %v1615_v41 = vmul.f32 %v1613_v3, %v1595_v32 }
 0xdb8   : > { %v1624_v43 = vperm.slane %v1615_v41, 3 }
 0xdbd   : > { %v1622_v5 = vpop.permute.xlu1 %1621 }
 0xdbe   : > { %v1625_v18 = vmul.f32 %v1624_v43, %v1622_v5 }
 0xdc0   : > { %v1626_v20 = vadd.f32 %v1625_v18, %v1618_v51 }
 0xdc2   : > { %2524 = vrcp.f32 %v1626_v20  ;;  %v1647_v10 = vmul.f32 %v1626_v20, %v2909_v35  ;;  %v1638_v29 = vand.u32 2147483648, %v1626_v20  ;;  %v1636_v49 = vand.u32 2147483647, %v1626_v20 }
 0xdc3   : > { %vm1632_vm4 = vweird.f32 %v1626_v20  ;;  %v1649_v59 = vmul.f32 %v1626_v20, %v2959_v52 }
 0xdc4   : > { %v1648_v38 = vsub.f32 %v2906_v31, %v1647_v10  ;;  %v1639_v12 = vor.u32 1.1754944e-38, %v1638_v29  ;;  %vm1637_vm6 = vcmp.eq.f32.partialorder %v1636_v49, 8.507059e+37 }
 0xdc6   : > { %1652 = vperm.xlu1 %2489, %v1648_v38  }
 0xdc8   : > { %v2525_v27 = vpop.eup %2524 }
 0xdc9   : > { %v1628_v34 = vmul.f32 %v2525_v27, %v1626_v20  ;;  %vm1633_vm2 = vweird.f32 %v2525_v27 }
 0xdca   : > { %vm1634_vm5 = vmor %vm1632_vm4, %vm1633_vm2 }
 0xdcb   : > { %v1629_v24 = vsub.f32 1.0, %v1628_v34 }
 0xdcd   : > { %v1630_v50 = vmul.f32 %v2525_v27, %v1629_v24 }
 0xdce   : > { %2490 = vset.pattern.permute.xlu1 %v2601_v4 }
 0xdcf   : > { %v1631_v47 = vadd.f32 %v2525_v27, %v1630_v50 }
 0xdd1   : > { %v1635_v32 = vsel %vm1634_vm5, %v2525_v27, %v1631_v47 }
 0xdd2   : > { %v1640_v54 = vsel %vm1637_vm6, %v1639_v12, %v1635_v32 }
 0xdd3   : > { %1643 = vperm.xlu0 %2488, %v1640_v54  }
 0xddb   : > { %2491 = vset.pattern.permute.xlu0 %v2601_v4 }
 0xe38   : > { %v1653_v57 = vpop.permute.xlu1 %1652 }
 0xe45   : > { %v1644_v56 = vpop.permute.xlu0 %1643 }
 0xe46   : > { %v1646_v13 = vmul.f32 %v1644_v56, %v1626_v20 }
 0xe48   : > { %v1655_v39 = vperm.slane %v1646_v13, 4 }
 0xe4a   : > { %v1656_v17 = vmul.f32 %v1655_v39, %v1653_v57 }
 0xe4c   : > { %v1657_v15 = vadd.f32 %v1656_v17, %v1649_v59 }
 0xe4e   : > { %2526 = vrcp.f32 %v1657_v15  ;;  %v1678_v1 = vmul.f32 %v1657_v15, %v2909_v35  ;;  %v1669_v41 = vand.u32 2147483648, %v1657_v15  ;;  %v1667_v4 = vand.u32 2147483647, %v1657_v15 }
 0xe4f   : > { %vm1663_vm8 = vweird.f32 %v1657_v15  ;;  %v1680_v34 = vmul.f32 %v1657_v15, %v2967_v40 }
 0xe50   : > { %v1679_v2 = vsub.f32 %v2906_v31, %v1678_v1  ;;  %v1670_v52 = vor.u32 1.1754944e-38, %v1669_v41  ;;  %vm1668_vm10 = vcmp.eq.f32.partialorder %v1667_v4, 8.507059e+37 }
 0xe52   : > { %1683 = vperm.xlu0 %2491, %v1679_v2  }
 0xe54   : > { %v2527_v46 = vpop.eup %2526 }
 0xe55   : > { %v1659_v0 = vmul.f32 %v2527_v46, %v1657_v15  ;;  %vm1664_vm7 = vweird.f32 %v2527_v46 }
 0xe56   : > { %vm1665_vm9 = vmor %vm1663_vm8, %vm1664_vm7 }
 0xe57   : > { %v1660_v3 = vsub.f32 1.0, %v1659_v0 }
 0xe59   : > { %v1661_v43 = vmul.f32 %v2527_v46, %v1660_v3 }
 0xe5a   : > { %2495 = vset.pattern.permute.xlu0 %v2603_v42 }
 0xe5b   : > { %v1662_v5 = vadd.f32 %v2527_v46, %v1661_v43 }
 0xe5d   : > { %v1666_v51 = vsel %vm1665_vm9, %v2527_v46, %v1662_v5 }
 0xe5e   : > { %v1671_v18 = vsel %vm1668_vm10, %v1670_v52, %v1666_v51 }
 0xe5f   : > { %1674 = vperm.xlu1 %2490, %v1671_v18  }
 0xe67   : > { %2493 = vset.pattern.permute.xlu1 %v2602_v45 }
 0xec4   : > { %v1684_v27 = vpop.permute.xlu0 %1683 }
 0xed1   : > { %v1675_v20 = vpop.permute.xlu1 %1674 }
 0xed2   : > { %v1677_v10 = vmul.f32 %v1675_v20, %v1657_v15 }
 0xed4   : > { %v1686_v38 = vperm.slane %v1677_v10, 5 }
 0xed6   : > { %v1687_v24 = vmul.f32 %v1686_v38, %v1684_v27 }
 0xed8   : > { %v1688_v29 = vadd.f32 %v1687_v24, %v1680_v34 }
 0xeda   : > { %2528 = vrcp.f32 %v1688_v29  ;;  %v1709_v50 = vmul.f32 %v1688_v29, %v2909_v35  ;;  %v1700_v54 = vand.u32 2147483648, %v1688_v29  ;;  %v1698_v45 = vand.u32 2147483647, %v1688_v29 }
 0xedb   : > { %vm1694_vm12 = vweird.f32 %v1688_v29  ;;  %v1711_v2 = vmul.f32 %v1688_v29, %v2976_v58 }
 0xedc   : > { %v1710_v49 = vsub.f32 %v2906_v31, %v1709_v50  ;;  %v1701_v40 = vor.u32 1.1754944e-38, %v1700_v54  ;;  %vm1699_vm14 = vcmp.eq.f32.partialorder %v1698_v45, 8.507059e+37 }
 0xede   : > { %1714 = vperm.xlu1 %2493, %v1710_v49  }
 0xee0   : > { %v2529_v47 = vpop.eup %2528 }
 0xee1   : > { %v1690_v12 = vmul.f32 %v2529_v47, %v1688_v29  ;;  %vm1695_vm11 = vweird.f32 %v2529_v47 }
 0xee2   : > { %vm1696_vm13 = vmor %vm1694_vm12, %vm1695_vm11 }
 0xee3   : > { %v1691_v32 = vsub.f32 1.0, %v1690_v12 }
 0xee5   : > { %v1692_v56 = vmul.f32 %v2529_v47, %v1691_v32 }
 0xee6   : > { %2494 = vset.pattern.permute.xlu1 %v2603_v42 }
 0xee7   : > { %v1693_v13 = vadd.f32 %v2529_v47, %v1692_v56 }
 0xee9   : > { %v1697_v39 = vsel %vm1696_vm13, %v2529_v47, %v1693_v13 }
 0xeea   : > { %v1702_v57 = vsel %vm1699_vm14, %v1701_v40, %v1697_v39 }
 0xeeb   : > { %1705 = vperm.xlu2 %2492, %v1702_v57  }
 0xf45   : > { %v1706_v59 = vpop.permute.xlu2 %1705 }
 0xf46   : > { %v1708_v17 = vmul.f32 %v1706_v59, %v1688_v29 }
 0xf48   : > { %v1717_v15 = vperm.slane %v1708_v17, 6 }
 0xf50   : > { %v1715_v1 = vpop.permute.xlu1 %1714 }
 0xf51   : > { %v1718_v46 = vmul.f32 %v1717_v15, %v1715_v1 }
 0xf53   : > { %v1719_v0 = vadd.f32 %v1718_v46, %v1711_v2 }
 0xf55   : > { %2530 = vrcp.f32 %v1719_v0  ;;  %v1740_v3 = vmul.f32 %v1719_v0, %v2909_v35  ;;  %v1731_v5 = vand.u32 2147483648, %v1719_v0  ;;  %v1729_v51 = vand.u32 2147483647, %v1719_v0 }
 0xf56   : > { %vm1725_vm0 = vweird.f32 %v1719_v0  ;;  %v1742_v29 = vmul.f32 %v1719_v0, %v2981_v14 }
 0xf57   : > { %v1741_v42 = vsub.f32 %v2906_v31, %v1740_v3  ;;  %v1732_v20 = vor.u32 1.1754944e-38, %v1731_v5  ;;  %vm1730_vm4 = vcmp.eq.f32.partialorder %v1729_v51, 8.507059e+37 }
 0xf59   : > { %1745 = vperm.xlu0 %2495, %v1741_v42  }
 0xf5b   : > { %v2531_v41 = vpop.eup %2530 }
 0xf5c   : > { %v1721_v43 = vmul.f32 %v2531_v41, %v1719_v0  ;;  %vm1726_vm15 = vweird.f32 %v2531_v41 }
 0xf5d   : > { %vm1727_vm2 = vmor %vm1725_vm0, %vm1726_vm15 }
 0xf5e   : > { %v1722_v4 = vsub.f32 1.0, %v1721_v43 }
 0xf60   : > { %v1723_v52 = vmul.f32 %v2531_v41, %v1722_v4 }
 0xf62   : > { %v1724_v18 = vadd.f32 %v2531_v41, %v1723_v52 }
 0xf64   : > { %v1728_v58 = vsel %vm1727_vm2, %v2531_v41, %v1724_v18 }
 0xf65   : > { %v1733_v10 = vsel %vm1730_vm4, %v1732_v20, %v1728_v58 }
 0xf66   : > { %1736 = vperm.xlu1 %2494, %v1733_v10  }
 0xfcb   : > { %v1746_v34 = vpop.permute.xlu0 %1745 }
 0xfd8   : > { %v1737_v38 = vpop.permute.xlu1 %1736 }
 0xfd9   : > { %v1739_v35 = vmul.f32 %v1737_v38, %v1719_v0 }
 0xfdb   : > { %v1748_v27 = vperm.slane %v1739_v35, 7 }
 0xfdd   : > { %v1749_v24 = vmul.f32 %v1748_v27, %v1746_v34 }
 0xfdf   : > { %v1750_v50 = vadd.f32 %v1749_v24, %v1742_v29 }
 0xfe1   : > { %v1751_v49 = vmul.f32 0.5, %v1750_v50 }
 0xfe3   : > { %1753 = vrot.lane.b32.xlu1 %v1751_v49, %s2604_s17 }
0x1055   : > { %v1754_v47 = vpop.permute.xlu1 %1753 }
0x1056   : > { %v1756_v12 = vsub.f32 %v2906_v31, %v1754_v47 }
0x1058   : > { %1796 = vmatpush.msra.mxu3 %v1756_v12 }
0x1059   : > { %2406 = vmatmul.msk.f32.vlgmr.msra.gmra.mxu3 %vm888_vm3, %v3115_v63 }
0x1061   : > { %2407 = vmatmul.msk.f32.gmra.mxu3 %vm888_vm3, %v3119_v6 }
0x1069   : > { %2408 = vmatmul.msk.f32.gmra.mxu3 %vm888_vm3, %v3123_v26 }
0x1071   : > { %2409 = vmatmul.msk.f32.gmra.mxu3 %vm888_vm3, %v3127_v16 }
0x1079   : > { %2410 = vmatmul.msk.f32.gmra.mxu3 %vm888_vm3, %v3131_v7 }
0x1081   : > { %2411 = vmatmul.msk.f32.gmra.mxu3 %vm888_vm3, %v3135_v55 }
0x1089   : > { %2412 = vmatmul.msk.f32.gmra.mxu3 %vm888_vm3, %v3139_v62 }
0x1091   : > { %2413 = vmatmul.msk.f32.gmra.mxu3 %vm888_vm3, %v3143_v21 }
0x10dc   : > { %v1798_v31 = vpop.f32.mrf.mxu3 }
0x10dd   : > { %v1822_v46 = vmul.f32 0.25, %v1798_v31 }
0x10e4   : > { %v1801_v14 = vpop.f32.mrf.mxu3 }
0x10e5   : > { %v1823_v2 = vmul.f32 0.25, %v1801_v14 }
0x10ec   : > { %v1804_v32 = vpop.f32.mrf.mxu3 }
0x10ed   : > { %v1824_v1 = vmul.f32 0.25, %v1804_v32 }
0x10f4   : > { %v1807_v54 = vpop.f32.mrf.mxu3 }
0x10f5   : > { %v1825_v15 = vmul.f32 0.25, %v1807_v54 }
0x10fc   : > { %v1810_v56 = vpop.f32.mrf.mxu3 }
0x10fd   : > { %v1826_v17 = vmul.f32 0.25, %v1810_v56 }
0x1104   : > { %v1813_v45 = vpop.f32.mrf.mxu3 }
0x1105   : > { %v1827_v59 = vmul.f32 0.25, %v1813_v45 }
0x110c   : > { %v1816_v13 = vpop.f32.mrf.mxu3 }
0x110d   : > { %v1828_v57 = vmul.f32 0.25, %v1816_v13 }
0x1114   : > { %v1819_v40 = vpop.f32.mrf.mxu3 }
0x1115   : > { %v1829_v39 = vmul.f32 0.25, %v1819_v40 }
0x1117   : > { %1838 = vmatpush.msrb.mxu0 %v1829_v39  ;;  %1858 = vmatpush.msrb.mxu1 %v1829_v39 }
0x1119   : > { %1839 = vmatpush.msrb.mxu0 %v1828_v57  ;;  %1859 = vmatpush.msrb.mxu1 %v1828_v57 }
0x111b   : > { %1840 = vmatpush.msrb.mxu0 %v1827_v59  ;;  %1860 = vmatpush.msrb.mxu1 %v1827_v59 }
0x111d   : > { %1841 = vmatpush.msrb.mxu0 %v1826_v17  ;;  %1861 = vmatpush.msrb.mxu1 %v1826_v17 }
0x111f   : > { %1842 = vmatpush.msrb.mxu0 %v1825_v15  ;;  %1862 = vmatpush.msrb.mxu1 %v1825_v15 }
0x1121   : > { %1843 = vmatpush.msrb.mxu0 %v1824_v1  ;;  %1863 = vmatpush.msrb.mxu1 %v1824_v1 }
0x1123   : > { %1844 = vmatpush.msrb.mxu0 %v1823_v2  ;;  %1864 = vmatpush.msrb.mxu1 %v1823_v2 }
0x1125   : > { %1845 = vmatpush.msrb.mxu0 %v1822_v46  ;;  %1865 = vmatpush.msrb.mxu1 %v1822_v46 }
0x1126   : > { %2414 = vmatmul.msk.f32.vlgmr.msrb.gmra.mxu0 %vm482_vm1, %v3154_v8  ;;  %2415 = vmatmul.msk.f32.vlgmr.msrb.gmra.mxu1 %vm482_vm1, %v3004_v36  ;;  %v1891_v36 = vsub.f32 %v3115_v63, %v3039_v60  ;;  %v1898_v63 = vsub.f32 %v3143_v21, %v3109_v11 }
0x112e   : > { %2416 = vmatmul.msk.f32.gmra.mxu1 %vm482_vm1, %v3014_v44 }
0x1136   : > { %2417 = vmatmul.msk.f32.gmra.mxu1 %vm482_vm1, %v3022_v22  ;;  %v1892_v22 = vsub.f32 %v3119_v6, %v3053_v19 }
0x113e   : > { %2418 = vmatmul.msk.f32.gmra.mxu1 %vm482_vm1, %v3030_v53  ;;  %v1893_v53 = vsub.f32 %v3123_v26, %v3067_v23 }
0x1146   : > { %2419 = vmatmul.msk.f32.gmra.mxu1 %vm482_vm1, %v3041_v61  ;;  %v1894_v61 = vsub.f32 %v3127_v16, %v3081_v37 }
0x114e   : > { %2420 = vmatmul.msk.f32.gmra.mxu1 %vm482_vm1, %v3055_v25  ;;  %v1895_v25 = vsub.f32 %v3131_v7, %v3091_v28 }
0x1156   : > { %2421 = vmatmul.msk.f32.gmra.mxu1 %vm482_vm1, %v3069_v33  ;;  %v1896_v33 = vsub.f32 %v3135_v55, %v3097_v30 }
0x115e   : > { %2422 = vmatmul.msk.f32.gmra.mxu1 %vm482_vm1, %v3083_v48  ;;  %v1897_v48 = vsub.f32 %v3139_v62, %v3103_v9 }
0x11a3   : > { %v1847_v44 = vpop.f32.mrf.mxu0  ;;  %v1867_v6 = vpop.f32.mrf.mxu1 }
0x11a4   : > { %1938 = vmatpush.msrb.mxu2 %v1847_v44 }
0x11a5   : > { %2423 = vmatmul.msk.f32.vlgmr.msrb.gmra.mxu2 %vm888_vm3, %v1891_v36 }
0x11ab   : > { %v1870_v26 = vpop.f32.mrf.mxu1 }
0x11ad   : > { %2424 = vmatmul.msk.f32.gmra.mxu2 %vm888_vm3, %v1892_v22 }
0x11b3   : > { %v1873_v3 = vpop.f32.mrf.mxu1 }
0x11b5   : > { %2425 = vmatmul.msk.f32.gmra.mxu2 %vm888_vm3, %v1893_v53 }
0x11bb   : > { %v1876_v52 = vpop.f32.mrf.mxu1 }
0x11bd   : > { %2426 = vmatmul.msk.f32.gmra.mxu2 %vm888_vm3, %v1894_v61 }
0x11c3   : > { %v1879_v38 = vpop.f32.mrf.mxu1 }
0x11c5   : > { %2427 = vmatmul.msk.f32.gmra.mxu2 %vm888_vm3, %v1895_v25 }
0x11cb   : > { %v1882_v50 = vpop.f32.mrf.mxu1 }
0x11cd   : > { %2428 = vmatmul.msk.f32.gmra.mxu2 %vm888_vm3, %v1896_v33 }
0x11d5   : > { %2429 = vmatmul.msk.f32.gmra.mxu2 %vm888_vm3, %v1897_v48 }
0x11dd   : > { %2430 = vmatmul.msk.f32.gmra.mxu2 %vm888_vm3, %v1898_v63 }
0x1228   : > { %v1940_v16 = vpop.f32.mrf.mxu2 }
0x1229   : > { %v1964_v7 = vmul.f32 0.5, %v1940_v16 }
0x122b   : > { %v1972_v8 = vadd.f32 %v1964_v7, %v1867_v6 }
0x122d   : > { %v1980_v0 = vadd.f32 %v1972_v8, %v3039_v60 }
0x122f   : > { %v1988_v55 = vsel %vm888_vm3, %v1980_v0, -inf }
0x1230   : > { %1989 = vmax.xlane.f32.xlu1 %v1988_v55  ;;  %v1943_v42 = vpop.f32.mrf.mxu2 }
0x1231   : > { %v1965_v62 = vmul.f32 0.5, %v1943_v42 }
0x1233   : > { %v1973_v41 = vadd.f32 %v1965_v62, %v1870_v26 }
0x1235   : > { %v1981_v43 = vadd.f32 %v1973_v41, %v3053_v19 }
0x1237   : > { %v1991_v21 = vsel %vm888_vm3, %v1981_v43, -inf }
0x1238   : > { %1992 = vmax.xlane.f32.xlu0 %v1991_v21  ;;  %v1946_v4 = vpop.f32.mrf.mxu2 }
0x1239   : > { %v1966_v5 = vmul.f32 0.5, %v1946_v4 }
0x123b   : > { %v1974_v51 = vadd.f32 %v1966_v5, %v1873_v3 }
0x123d   : > { %v1982_v18 = vadd.f32 %v1974_v51, %v3067_v23 }
0x123f   : > { %v1994_v60 = vsel %vm888_vm3, %v1982_v18, -inf }
0x1240   : > { %1995 = vmax.xlane.f32.xlu1 %v1994_v60  ;;  %v1949_v20 = vpop.f32.mrf.mxu2 }
0x1241   : > { %v1967_v58 = vmul.f32 0.5, %v1949_v20 }
0x1243   : > { %v1975_v10 = vadd.f32 %v1967_v58, %v1876_v52 }
0x1245   : > { %v1983_v35 = vadd.f32 %v1975_v10, %v3081_v37  ;;  %v1885_v37 = vpop.f32.mrf.mxu1 }
0x1247   : > { %v1997_v19 = vsel %vm888_vm3, %v1983_v35, -inf }
0x1248   : > { %1998 = vmax.xlane.f32.xlu0 %v1997_v19  ;;  %v1952_v27 = vpop.f32.mrf.mxu2 }
0x1249   : > { %v1968_v34 = vmul.f32 0.5, %v1952_v27 }
0x124b   : > { %v1976_v24 = vadd.f32 %v1968_v34, %v1879_v38 }
0x124d   : > { %v1984_v29 = vadd.f32 %v1976_v24, %v3091_v28  ;;  %v1888_v39 = vpop.f32.mrf.mxu1 }
0x124f   : > { %v2000_v23 = vsel %vm888_vm3, %v1984_v29, -inf }
0x1250   : > { %2001 = vmax.xlane.f32.xlu1 %v2000_v23  ;;  %v1955_v49 = vpop.f32.mrf.mxu2 }
0x1251   : > { %v1969_v47 = vmul.f32 0.5, %v1955_v49 }
0x1253   : > { %v1977_v12 = vadd.f32 %v1969_v47, %v1882_v50 }
0x1255   : > { %v1985_v31 = vadd.f32 %v1977_v12, %v3097_v30 }
0x1257   : > { %v2003_v14 = vsel %vm888_vm3, %v1985_v31, -inf }
0x1258   : > { %2004 = vmax.xlane.f32.xlu0 %v2003_v14  ;;  %v1958_v32 = vpop.f32.mrf.mxu2 }
0x1259   : > { %v1970_v54 = vmul.f32 0.5, %v1958_v32 }
0x125b   : > { %v1978_v56 = vadd.f32 %v1970_v54, %v1885_v37 }
0x125d   : > { %v1986_v45 = vadd.f32 %v1978_v56, %v3103_v9 }
0x125f   : > { %v2006_v28 = vsel %vm888_vm3, %v1986_v45, -inf }
0x1260   : > { %2007 = vmax.xlane.f32.xlu1 %v2006_v28  ;;  %v1961_v13 = vpop.f32.mrf.mxu2 }
0x1261   : > { %v1971_v40 = vmul.f32 0.5, %v1961_v13 }
0x1263   : > { %v1979_v57 = vadd.f32 %v1971_v40, %v1888_v39 }
0x1265   : > { %v1987_v59 = vadd.f32 %v1979_v57, %v3109_v11 }
0x1267   : > { %v2009_v30 = vsel %vm888_vm3, %v1987_v59, -inf }
0x1268   : > { %2010 = vmax.xlane.f32.xlu0 %v2009_v30 }
0x12a3   : > { %v1990_v17 = vpop.xlane.xlu1 %1989 }
0x12a4   : > { %v3271_v15 = vsub.f32 %v1980_v0, %v1990_v17 }
0x12a6   : > { %v2020_v1 = vmul.f32 1.442695, %v3271_v15 }
0x12a8   : > { %2532 = vpow2.f32 %v2020_v1 }
0x12ab   : > { %v1993_v2 = vpop.xlane.xlu0 %1992 }
0x12ac   : > { %v3274_v9 = vsub.f32 %v1981_v43, %v1993_v2 }
0x12ae   : > { %v3276_v46 = vpop.eup %2532  ;;  %v2022_v36 = vmul.f32 1.442695, %v3274_v9 }
0x12af   : > { %v2036_v44 = vsel %vm888_vm3, %v3276_v46, 0.0 }
0x12b0   : > { %2534 = vpow2.f32 %v2022_v36  ;;  %2037 = vadd.xlane.f32.xlu1 %v2036_v44 }
0x12b3   : > { %v1996_v11 = vpop.xlane.xlu1 %1995 }
0x12b4   : > { %v3281_v22 = vsub.f32 %v1982_v18, %v1996_v11 }
0x12b6   : > { %v3283_v53 = vpop.eup %2534  ;;  %v2024_v61 = vmul.f32 1.442695, %v3281_v22 }
0x12b7   : > { %v2039_v25 = vsel %vm888_vm3, %v3283_v53, 0.0 }
0x12b8   : > { %2536 = vpow2.f32 %v2024_v61  ;;  %2040 = vadd.xlane.f32.xlu0 %v2039_v25 }
0x12bb   : > { %v1999_v33 = vpop.xlane.xlu0 %1998 }
0x12bc   : > { %v3288_v48 = vsub.f32 %v1983_v35, %v1999_v33 }
0x12be   : > { %v3290_v63 = vpop.eup %2536  ;;  %v2026_v6 = vmul.f32 1.442695, %v3288_v48 }
0x12bf   : > { %v2042_v26 = vsel %vm888_vm3, %v3290_v63, 0.0 }
0x12c0   : > { %2538 = vpow2.f32 %v2026_v6  ;;  %2043 = vadd.xlane.f32.xlu1 %v2042_v26 }
0x12c3   : > { %v2002_v16 = vpop.xlane.xlu1 %2001 }
0x12c4   : > { %v3295_v7 = vsub.f32 %v1984_v29, %v2002_v16 }
0x12c6   : > { %v3297_v8 = vpop.eup %2538  ;;  %v2028_v0 = vmul.f32 1.442695, %v3295_v7 }
0x12c7   : > { %v2045_v55 = vsel %vm888_vm3, %v3297_v8, 0.0 }
0x12c8   : > { %2540 = vpow2.f32 %v2028_v0  ;;  %2046 = vadd.xlane.f32.xlu2 %v2045_v55 }
0x12cb   : > { %v2005_v3 = vpop.xlane.xlu0 %2004 }
0x12cc   : > { %v3302_v42 = vsub.f32 %v1985_v31, %v2005_v3 }
0x12ce   : > { %v3304_v62 = vpop.eup %2540  ;;  %v2030_v41 = vmul.f32 1.442695, %v3302_v42 }
0x12cf   : > { %v2048_v43 = vsel %vm888_vm3, %v3304_v62, 0.0 }
0x12d0   : > { %2542 = vpow2.f32 %v2030_v41  ;;  %2049 = vadd.xlane.f32.xlu0 %v2048_v43 }
0x12d3   : > { %v2008_v21 = vpop.xlane.xlu1 %2007 }
0x12d4   : > { %v3309_v4 = vsub.f32 %v1986_v45, %v2008_v21 }
0x12d6   : > { %v3311_v5 = vpop.eup %2542  ;;  %v2032_v52 = vmul.f32 1.442695, %v3309_v4 }
0x12d7   : > { %v2051_v51 = vsel %vm888_vm3, %v3311_v5, 0.0 }
0x12d8   : > { %2544 = vpow2.f32 %v2032_v52  ;;  %2052 = vadd.xlane.f32.xlu1 %v2051_v51 }
0x12db   : > { %v2011_v18 = vpop.xlane.xlu0 %2010 }
0x12dc   : > { %v3316_v60 = vsub.f32 %v1987_v59, %v2011_v18 }
0x12de   : > { %v3318_v20 = vpop.eup %2544  ;;  %v2034_v58 = vmul.f32 1.442695, %v3316_v60 }
0x12df   : > { %v2054_v10 = vsel %vm888_vm3, %v3318_v20, 0.0 }
0x12e0   : > { %2546 = vpow2.f32 %v2034_v58  ;;  %2055 = vadd.xlane.f32.xlu0 %v2054_v10 }
0x12e6   : > { %v3323_v38 = vpop.eup %2546 }
0x12e7   : > { %v2057_v35 = vsel %vm888_vm3, %v3323_v38, 0.0 }
0x12e8   : > { %2058 = vadd.xlane.f32.xlu1 %v2057_v35 }
0x1323   : > { %v3327_v19 = vpop.xlane.xlu1 %2037 }
0x1324   : > { %2548 = vrcp.f32 %v3327_v19  ;;  %v2095_v50 = vand.u32 2147483648, %v3327_v19  ;;  %v2093_v49 = vand.u32 2147483647, %v3327_v19  ;;  %vm2089_vm5 = vweird.f32 %v3327_v19 }
0x1326   : > { %v2096_v31 = vor.u32 1.1754944e-38, %v2095_v50  ;;  %vm2094_vm7 = vcmp.eq.f32.partialorder %v2093_v49, 8.507059e+37 }
0x132a   : > { %v2549_v27 = vpop.eup %2548 }
0x132b   : > { %v2085_v34 = vmul.f32 %v2549_v27, %v3327_v19  ;;  %v3331_v24 = vpop.xlane.xlu0 %2040  ;;  %vm2090_vm1 = vweird.f32 %v2549_v27 }
0x132c   : > { %2550 = vrcp.f32 %v3331_v24  ;;  %vm2091_vm6 = vmor %vm2089_vm5, %vm2090_vm1  ;;  %v2109_v28 = vand.u32 2147483648, %v3331_v24  ;;  %v2107_v40 = vand.u32 2147483647, %v3331_v24  ;;  %vm2103_vm9 = vweird.f32 %v3331_v24 }
0x132d   : > { %v2086_v29 = vsub.f32 1.0, %v2085_v34 }
0x132e   : > { %v2110_v59 = vor.u32 1.1754944e-38, %v2109_v28  ;;  %vm2108_vm11 = vcmp.eq.f32.partialorder %v2107_v40, 8.507059e+37 }
0x132f   : > { %v2087_v23 = vmul.f32 %v2549_v27, %v2086_v29 }
0x1331   : > { %v2088_v47 = vadd.f32 %v2549_v27, %v2087_v23 }
0x1332   : > { %v2551_v12 = vpop.eup %2550 }
0x1333   : > { %v2099_v14 = vmul.f32 %v2551_v12, %v3331_v24  ;;  %v3338_v37 = vpop.xlane.xlu1 %2043  ;;  %v2092_v32 = vsel %vm2091_vm6, %v2549_v27, %v2088_v47  ;;  %vm2104_vm8 = vweird.f32 %v2551_v12 }
0x1334   : > { %2552 = vrcp.f32 %v3338_v37  ;;  %v2097_v54 = vsel %vm2094_vm7, %v2096_v31, %v2092_v32  ;;  %vm2105_vm10 = vmor %vm2103_vm9, %vm2104_vm8  ;;  %v2123_v44 = vand.u32 2147483648, %v3338_v37  ;;  %v2121_v61 = vand.u32 2147483647, %v3338_v37 }
0x1335   : > { %v2100_v56 = vsub.f32 1.0, %v2099_v14  ;;  %v2196_v45 = vmul.f32 %v3276_v46, %v2097_v54  ;;  %vm2117_vm13 = vweird.f32 %v3338_v37 }
0x1336   : > { %v2124_v6 = vor.u32 1.1754944e-38, %v2123_v44  ;;  %vm2122_vm15 = vcmp.eq.f32.partialorder %v2121_v61, 8.507059e+37 }
0x1337   : > { %2212 = vrot.lane.b32.xlu0 %v2196_v45, %s2596_s14  ;;  %v2101_v13 = vmul.f32 %v2551_v12, %v2100_v56 }
0x1339   : > { %v2102_v39 = vadd.f32 %v2551_v12, %v2101_v13 }
0x133a   : > { %v2553_v57 = vpop.eup %2552 }
0x133b   : > { %v2113_v30 = vmul.f32 %v2553_v57, %v3338_v37  ;;  %v3347_v17 = vpop.xlane.xlu2 %2046  ;;  %v2106_v1 = vsel %vm2105_vm10, %v2551_v12, %v2102_v39  ;;  %vm2118_vm12 = vweird.f32 %v2553_v57 }
0x133c   : > { %2554 = vrcp.f32 %v3347_v17  ;;  %v2111_v2 = vsel %vm2108_vm11, %v2110_v59, %v2106_v1  ;;  %vm2119_vm14 = vmor %vm2117_vm13, %vm2118_vm12  ;;  %v2137_v41 = vand.u32 2147483648, %v3347_v17  ;;  %v2135_v21 = vand.u32 2147483647, %v3347_v17 }
0x133d   : > { %v2114_v46 = vsub.f32 1.0, %v2113_v30  ;;  %v2197_v36 = vmul.f32 %v3283_v53, %v2111_v2  ;;  %vm2131_vm2 = vweird.f32 %v3347_v17 }
0x133e   : > { %v2138_v18 = vor.u32 1.1754944e-38, %v2137_v41  ;;  %vm2136_vm1 = vcmp.eq.f32.partialorder %v2135_v21, 8.507059e+37 }
0x133f   : > { %2214 = vrot.lane.b32.xlu1 %v2197_v36, %s2596_s14  ;;  %v2115_v11 = vmul.f32 %v2553_v57, %v2114_v46 }
0x1341   : > { %v2116_v25 = vadd.f32 %v2553_v57, %v2115_v11 }
0x1342   : > { %v2555_v33 = vpop.eup %2554 }
0x1343   : > { %v2127_v26 = vmul.f32 %v2555_v33, %v3347_v17  ;;  %v3356_v16 = vpop.xlane.xlu0 %2049  ;;  %v2120_v0 = vsel %vm2119_vm14, %v2553_v57, %v2116_v25  ;;  %vm2132_vm0 = vweird.f32 %v2555_v33 }
0x1344   : > { %2556 = vrcp.f32 %v3356_v16  ;;  %v2125_v53 = vsel %vm2122_vm15, %v2124_v6, %v2120_v0  ;;  %vm2133_vm4 = vmor %vm2131_vm2, %vm2132_vm0  ;;  %v2151_v29 = vand.u32 2147483648, %v3356_v16  ;;  %v2149_v23 = vand.u32 2147483647, %v3356_v16 }
0x1345   : > { %v2128_v55 = vsub.f32 1.0, %v2127_v26  ;;  %v2198_v3 = vmul.f32 %v3290_v63, %v2125_v53  ;;  %vm2145_vm6 = vweird.f32 %v3356_v16 }
0x1346   : > { %v2152_v12 = vor.u32 1.1754944e-38, %v2151_v29  ;;  %vm2150_vm8 = vcmp.eq.f32.partialorder %v2149_v23, 8.507059e+37 }
0x1347   : > { %2216 = vrot.lane.b32.xlu0 %v2198_v3, %s2596_s14  ;;  %v2129_v43 = vmul.f32 %v2555_v33, %v2128_v55 }
0x1349   : > { %v2130_v52 = vadd.f32 %v2555_v33, %v2129_v43 }
0x134a   : > { %v2557_v51 = vpop.eup %2556 }
0x134b   : > { %v2141_v58 = vmul.f32 %v2557_v51, %v3356_v16  ;;  %v3365_v10 = vpop.xlane.xlu1 %2052  ;;  %v2134_v35 = vsel %vm2133_vm4, %v2555_v33, %v2130_v52  ;;  %vm2146_vm5 = vweird.f32 %v2557_v51 }
0x134c   : > { %2558 = vrcp.f32 %v3365_v10  ;;  %v2139_v63 = vsel %vm2136_vm1, %v2138_v18, %v2134_v35  ;;  %vm2147_vm7 = vmor %vm2145_vm6, %vm2146_vm5  ;;  %v2165_v45 = vand.u32 2147483648, %v3365_v10  ;;  %v2163_v13 = vand.u32 2147483647, %v3365_v10 }
0x134d   : > { %v2142_v27 = vsub.f32 1.0, %v2141_v58  ;;  %v2199_v34 = vmul.f32 %v3297_v8, %v2139_v63  ;;  %vm2159_vm10 = vweird.f32 %v3365_v10  ;;  %vm2244_vm6 = vcmask 130048  }
0x134e   : > { %v2166_v57 = vor.u32 1.1754944e-38, %v2165_v45  ;;  %vm2164_vm12 = vcmp.eq.f32.partialorder %v2163_v13, 8.507059e+37 }
0x134f   : > { %2218 = vrot.lane.b32.xlu2 %v2199_v34, %s2596_s14  ;;  %v2143_v50 = vmul.f32 %v2557_v51, %v2142_v27 }
0x1351   : > { %v2144_v49 = vadd.f32 %v2557_v51, %v2143_v50 }
0x1352   : > { %v2559_v47 = vpop.eup %2558 }
0x1353   : > { %v2155_v31 = vmul.f32 %v2559_v47, %v3365_v10  ;;  %v3374_v14 = vpop.xlane.xlu0 %2055  ;;  %v2148_v32 = vsel %vm2147_vm7, %v2557_v51, %v2144_v49  ;;  %vm2160_vm9 = vweird.f32 %v2559_v47 }
0x1354   : > { %2560 = vrcp.f32 %v3374_v14  ;;  %v2153_v8 = vsel %vm2150_vm8, %v2152_v12, %v2148_v32  ;;  %vm2161_vm11 = vmor %vm2159_vm10, %vm2160_vm9  ;;  %v2179_v36 = vand.u32 2147483648, %v3374_v14  ;;  %v2177_v11 = vand.u32 2147483647, %v3374_v14 }
0x1355   : > { %v2156_v54 = vsub.f32 1.0, %v2155_v31  ;;  %v2200_v56 = vmul.f32 %v3304_v62, %v2153_v8  ;;  %vm2173_vm14 = vweird.f32 %v3374_v14 }
0x1356   : > { %v2180_v33 = vor.u32 1.1754944e-38, %v2179_v36  ;;  %vm2178_vm0 = vcmp.eq.f32.partialorder %v2177_v11, 8.507059e+37 }
0x1357   : > { %2220 = vrot.lane.b32.xlu1 %v2200_v56, %s2596_s14  ;;  %v2157_v28 = vmul.f32 %v2559_v47, %v2156_v54 }
0x1359   : > { %v2158_v40 = vadd.f32 %v2559_v47, %v2157_v28 }
0x135a   : > { %v2561_v39 = vpop.eup %2560 }
0x135b   : > { %v2169_v59 = vmul.f32 %v2561_v39, %v3374_v14  ;;  %v3383_v30 = vpop.xlane.xlu1 %2058  ;;  %v2162_v1 = vsel %vm2161_vm11, %v2559_v47, %v2158_v40  ;;  %vm2174_vm13 = vweird.f32 %v2561_v39 }
0x135c   : > { %2562 = vrcp.f32 %v3383_v30  ;;  %v2167_v62 = vsel %vm2164_vm12, %v2166_v57, %v2162_v1  ;;  %vm2175_vm15 = vmor %vm2173_vm14, %vm2174_vm13  ;;  %v2193_v55 = vand.u32 2147483648, %v3383_v30  ;;  %v2191_v41 = vand.u32 2147483647, %v3383_v30 }
0x135d   : > { %v2170_v2 = vsub.f32 1.0, %v2169_v59  ;;  %v2201_v46 = vmul.f32 %v3311_v5, %v2167_v62  ;;  %vm2187_vm4 = vweird.f32 %v3383_v30  ;;  %2564 = vlog2.f32 %v3327_v19 }
0x135e   : > { %v2194_v21 = vor.u32 1.1754944e-38, %v2193_v55  ;;  %vm2192_vm5 = vcmp.eq.f32.partialorder %v2191_v41, 8.507059e+37  ;;  %2566 = vlog2.f32 %v3347_v17 }
0x135f   : > { %2222 = vrot.lane.b32.xlu0 %v2201_v46, %s2596_s14  ;;  %v2171_v44 = vmul.f32 %v2561_v39, %v2170_v2  ;;  %2568 = vlog2.f32 %v3331_v24 }
0x1360   : > { %2570 = vlog2.f32 %v3338_v37 }
0x1361   : > { %v2172_v61 = vadd.f32 %v2561_v39, %v2171_v44  ;;  %2572 = vlog2.f32 %v3356_v16 }
0x1362   : > { %v2563_v25 = vpop.eup %2562  ;;  %2574 = vlog2.f32 %v3365_v10 }
0x1363   : > { %v2183_v6 = vmul.f32 %v2563_v25, %v3383_v30  ;;  %v2176_v26 = vsel %vm2175_vm15, %v2561_v39, %v2172_v61  ;;  %vm2188_vm2 = vweird.f32 %v2563_v25  ;;  %2576 = vlog2.f32 %v3374_v14 }
0x1364   : > { %v2181_v0 = vsel %vm2178_vm0, %v2180_v33, %v2176_v26  ;;  %vm2189_vm1 = vmor %vm2187_vm4, %vm2188_vm2  ;;  %2578 = vlog2.f32 %v3383_v30 }
0x1365   : > { %v2184_v5 = vsub.f32 1.0, %v2183_v6  ;;  %v2202_v53 = vmul.f32 %v3318_v20, %v2181_v0  ;;  %v2565_v20 = vpop.eup %2564 }
0x1366   : > { %v2567_v58 = vpop.eup %2566  ;;  %v2061_v63 = vmul.f32 0.6931472, %v2565_v20 }
0x1367   : > { %2224 = vrot.lane.b32.xlu1 %v2202_v53, %s2596_s14  ;;  %v2185_v3 = vmul.f32 %v2563_v25, %v2184_v5  ;;  %v2067_v35 = vmul.f32 0.6931472, %v2567_v58  ;;  %v2569_v17 = vpop.eup %2568 }
0x1368   : > { %v2076_v19 = vsub.f32 %v3271_v15, %v2061_v63  ;;  %v2063_v50 = vmul.f32 0.6931472, %v2569_v17 }
0x1369   : > { %v2186_v43 = vadd.f32 %v2563_v25, %v2185_v3 }
0x136a   : > { %v2077_v23 = vsub.f32 %v3274_v9, %v2063_v50 }
0x136b   : > { %v2190_v52 = vsel %vm2189_vm1, %v2563_v25, %v2186_v43 }
0x136c   : > { %v2195_v51 = vsel %vm2192_vm5, %v2194_v21, %v2190_v52 }
0x136d   : > { %v2203_v18 = vmul.f32 %v3323_v38, %v2195_v51  ;;  %v2079_v38 = vsub.f32 %v3288_v48, %v2067_v35  ;;  %v2571_v48 = vpop.eup %2570 }
0x136e   : > { %v2065_v47 = vmul.f32 0.6931472, %v2571_v48  ;;  %v2573_v37 = vpop.eup %2572 }
0x136f   : > { %2226 = vrot.lane.b32.xlu0 %v2203_v18, %s2596_s14  ;;  %v2069_v9 = vmul.f32 0.6931472, %v2573_v37  ;;  %v2575_v54 = vpop.eup %2574 }
0x1370   : > { %v2078_v12 = vsub.f32 %v3281_v22, %v2065_v47  ;;  %v2071_v22 = vmul.f32 0.6931472, %v2575_v54  ;;  %v2577_v16 = vpop.eup %2576 }
0x1371   : > { %v2080_v8 = vsub.f32 %v3295_v7, %v2069_v9  ;;  %v2073_v7 = vmul.f32 0.6931472, %v2577_v16  ;;  %v2579_v39 = vpop.eup %2578 }
0x1372   : > { %v2081_v28 = vsub.f32 %v3302_v42, %v2071_v22  ;;  %v2075_v14 = vmul.f32 0.6931472, %v2579_v39 }
0x1373   : > { %v2082_v40 = vsub.f32 %v3309_v4, %v2073_v7 }
0x1374   : > { %v2083_v42 = vsub.f32 %v3316_v60, %v2075_v14 }
0x13a9   : > { %v2219_v27 = vpop.permute.xlu2 %2218  ;;  %v2213_v34 = vpop.permute.xlu0 %2212 }
0x13aa   : > { %v2239_v24 = vsel %vm888_vm3, %v2079_v38, %v2219_v27  ;;  %v2236_v29 = vsel %vm888_vm3, %v2076_v19, %v2213_v34 }
0x13ab   : > { %2248 = vst.msk [vmem:[%s3406_s19 + $0x18] sm:$0xff] %vm2244_vm6, %v2239_v24 }
0x13ac   : > { %2245 = vst.msk [vmem:[%s3406_s19] sm:$0xff] %vm2244_vm6, %v2236_v29 }
0x13b1   : > { %v2215_v49 = vpop.permute.xlu1 %2214 }
0x13b2   : > { %v2237_v15 = vsel %vm888_vm3, %v2077_v23, %v2215_v49 }
0x13b3   : > { %2246 = vst.msk [vmem:[%s3406_s19 + $0x8] sm:$0xff] %vm2244_vm6, %v2237_v15 }
0x13b9   : > { %v2217_v31 = vpop.permute.xlu0 %2216 }
0x13ba   : > { %v2238_v32 = vsel %vm888_vm3, %v2078_v12, %v2217_v31 }
0x13bb   : > { %2247 = vst.msk [vmem:[%s3406_s19 + $0x10] sm:$0xff] %vm2244_vm6, %v2238_v32 }
0x13c9   : > { %v2221_v56 = vpop.permute.xlu1 %2220 }
0x13ca   : > { %v2240_v45 = vsel %vm888_vm3, %v2080_v8, %v2221_v56 }
0x13cb   : > { %2249 = vst.msk [vmem:[%s3406_s19 + $0x20] sm:$0xff] %vm2244_vm6, %v2240_v45 }
0x13d1   : > { %v2223_v13 = vpop.permute.xlu0 %2222 }
0x13d2   : > { %v2241_v10 = vsel %vm888_vm3, %v2081_v28, %v2223_v13 }
0x13d3   : > { %2250 = vst.msk [vmem:[%s3406_s19 + $0x28] sm:$0xff] %vm2244_vm6, %v2241_v10 }
0x13d9   : > { %v2225_v57 = vpop.permute.xlu1 %2224 }
0x13da   : > { %v2242_v59 = vsel %vm888_vm3, %v2082_v40, %v2225_v57 }
0x13db   : > { %2251 = vst.msk [vmem:[%s3406_s19 + $0x30] sm:$0xff] %vm2244_vm6, %v2242_v59 }
0x13e1   : > { %v2227_v1 = vpop.permute.xlu0 %2226 }
0x13e2   : > { %v2243_v62 = vsel %vm888_vm3, %v2083_v42, %v2227_v1 }
0x13e3   : > { %2252 = vst.msk [vmem:[%s3406_s19 + $0x38] sm:$0xff] %vm2244_vm6, %v2243_v62 }
0x13e4 PF: > { %s20_s13 = sadd.s32 1, %s2592_s13  }
0x13e5   : > { %p17_p4 = scmp.ge.s32.totalorder %s20_s13, 4  }
0x13e7   :  { %19 = sbr.rel (!%p17_p4) target bundleno = 1 (0x1), region = 93 }

</bundles_post_ra>
